<compile_context>
chip_gen: v5e
topology: v5e:2x2
jax: 0.10.0
libtpu: 0.0.40
codegen_flags: <defaults>
</compile_context>

<pallas_src>
import functools

import jax
import jax.numpy as jnp
from jax import lax
from jax.experimental import pallas as pl
from jax.experimental.pallas import tpu as pltpu


# ---------------------------------------------------------------------------
# Pallas kernels (one invocation per layer; lane-dense (Cout, M) outputs)
# ---------------------------------------------------------------------------
def _conv_bn_lrelu_kernel(pt_ref, w_ref, b_ref, gamma_ref, beta_ref, o_ref, *,
                          eps):
    """Fused Conv3d (im2col matmul) + bias + BatchNorm3d + LeakyReLU(0.2).

    pt_ref:           (K, M)    bf16  im2col patches, transposed
    w_ref:            (Cout, K) bf16  weight matrix
    b/gamma/beta_ref: (Cout, 1) f32   per-channel bias / BN affine
    o_ref:            (Cout, M) bf16  M = N*Do*Ho*Wo on the lane axis
    """
    acc = jnp.dot(w_ref[...], pt_ref[...],
                  preferred_element_type=jnp.float32)          # (Cout, M) f32
    acc = acc + b_ref[...]
    # BatchNorm training-mode batch statistics: per-channel over N,D,H,W == M.
    mean = jnp.mean(acc, axis=1, keepdims=True)                # (Cout, 1)
    var = jnp.mean((acc - mean) ** 2, axis=1, keepdims=True)   # biased var
    y = (acc - mean) * (gamma_ref[...] * lax.rsqrt(var + eps)) + beta_ref[...]
    o_ref[...] = jnp.where(y >= 0.0, y, 0.2 * y).astype(o_ref.dtype)


def _conv_sigmoid_kernel(pt_ref, w_ref, b_ref, o_ref):
    acc = jnp.dot(w_ref[...], pt_ref[...],
                  preferred_element_type=jnp.float32)
    o_ref[...] = jax.nn.sigmoid(acc + b_ref[...])


def _vmem_spec():
    return pl.BlockSpec(memory_space=pltpu.MemorySpace.VMEM)


def pallas_conv_bn_lrelu(patches_t, w_mat, b, gamma, beta, eps=1e-5):
    """patches_t: (K, M) bf16; w_mat: (Cout, K) bf16; b/gamma/beta: (Cout,) f32."""
    _, M = patches_t.shape
    Cout = w_mat.shape[0]
    return pl.pallas_call(
        functools.partial(_conv_bn_lrelu_kernel, eps=eps),
        out_shape=jax.ShapeDtypeStruct((Cout, M), jnp.bfloat16),
        in_specs=[_vmem_spec()] * 5,
        out_specs=_vmem_spec(),
    )(patches_t, w_mat,
      b.reshape(Cout, 1), gamma.reshape(Cout, 1), beta.reshape(Cout, 1))


def pallas_conv_sigmoid(patches_t, w_mat, b):
    _, M = patches_t.shape
    Cout = w_mat.shape[0]
    return pl.pallas_call(
        _conv_sigmoid_kernel,
        out_shape=jax.ShapeDtypeStruct((Cout, M), jnp.float32),
        in_specs=[_vmem_spec()] * 3,
        out_specs=_vmem_spec(),
    )(patches_t, w_mat, b.reshape(Cout, 1))


# ---------------------------------------------------------------------------
# JAX-side glue: transpose-free im2col in channel-first layout, layer wrappers
# ---------------------------------------------------------------------------
def im2col_cndhw(x, ksize, stride, pad):
    """x: (C, N, D, H, W) -> patches^T of shape (K, M).

    K = C*kd*kh*kw ordered (Cin, kd, kh, kw) to match the PyTorch weight
    reshape (Cout, Cin*kd*kh*kw); M = N*Do*Ho*Wo ordered (N, Do, Ho, Wo).
    The kd*kh*kw axis is stacked directly after C, so a single reshape (no
    transpose) yields the (K, M) slab the lane-dense kernel consumes.
    """
    C, N, D, H, W = x.shape
    kd, kh, kw = ksize
    sd, sh, sw = stride
    pd, ph, pw = pad
    xp = jnp.pad(x, ((0, 0), (0, 0), (pd, pd), (ph, ph), (pw, pw)))
    Do = (D + 2 * pd - kd) // sd + 1
    Ho = (H + 2 * ph - kh) // sh + 1
    Wo = (W + 2 * pw - kw) // sw + 1
    cols = []
    for i in range(kd):
        for j in range(kh):
            for k in range(kw):
                cols.append(
                    xp[:, :, i:i + sd * Do:sd, j:j + sh * Ho:sh, k:k + sw * Wo:sw]
                )
    cols = jnp.stack(cols, axis=1)            # (C, kd*kh*kw, N, Do, Ho, Wo)
    patches_t = cols.reshape(C * kd * kh * kw, N * Do * Ho * Wo)
    return patches_t, (N, Do, Ho, Wo)


def conv3d_bn_lrelu(x, w, b, gamma, beta, stride, pad):
    """x: (Cin, N, D, H, W); w: (Cout, Cin, kd, kh, kw) -> (Cout, N, Do, Ho, Wo)."""
    Cout = w.shape[0]
    patches_t, (N, Do, Ho, Wo) = im2col_cndhw(x, w.shape[2:], stride, pad)
    w_mat = w.reshape(Cout, -1)
    out = pallas_conv_bn_lrelu(patches_t.astype(jnp.bfloat16),
                               w_mat.astype(jnp.bfloat16), b, gamma, beta)
    return out.reshape(Cout, N, Do, Ho, Wo)


def conv3d_sigmoid(x, w, b, stride, pad):
    Cout = w.shape[0]
    patches_t, (N, Do, Ho, Wo) = im2col_cndhw(x, w.shape[2:], stride, pad)
    w_mat = w.reshape(Cout, -1)
    out = pallas_conv_sigmoid(patches_t.astype(jnp.bfloat16),
                              w_mat.astype(jnp.bfloat16), b)
    return out.reshape(Cout, N, Do, Ho, Wo)


def init_discriminator_params(key, channels, kernels):
    params = []
    cin = 1
    for cout, k in zip(channels, kernels):
        key, kw_, kb_ = jax.random.split(key, 3)
        fan_in = cin * k[0] * k[1] * k[2]
        bound = 1.0 / float(fan_in) ** 0.5
        w = jax.random.uniform(kw_, (cout, cin, *k), jnp.float32, -bound, bound)
        b = jax.random.uniform(kb_, (cout,), jnp.float32, -bound, bound)
        params.append(
            dict(w=w, b=b,
                 gamma=jnp.ones((cout,), jnp.float32),
                 beta=jnp.zeros((cout,), jnp.float32))
        )
        cin = cout
    return params


def discriminator_forward(params, input_, strides, paddings):
    """input_: (seq_len, batch, 1, H, W), as in the PyTorch reference."""
    # PyTorch permutes to (batch, 1, seq, H, W) NCDHW; we carry activations in
    # a channel-first (C, N, D, H, W) layout so every Pallas (Cout, M) output
    # reshapes for free into the next layer's input (no 5-D transposes).
    x = jnp.transpose(input_, (2, 1, 0, 3, 4))  # -> (1, batch, seq, H, W)
    for li in range(5):
        p = params[li]
        x = conv3d_bn_lrelu(x, p["w"], p["b"], p["gamma"], p["beta"],
                            strides[li], paddings[li])
    p = params[5]
    x = conv3d_sigmoid(x, p["w"], p["b"], strides[5], paddings[5])
    # back to NCDHW, then squeeze (matches `output.squeeze()` in the reference)
    x = jnp.transpose(x, (1, 0, 2, 3, 4))
    return jnp.squeeze(x)


class DCGANPallas:
    """DCGAN.forward simply delegates to the injected generator."""

    def __init__(self, generator, params, strides, paddings):
        self.generator = generator
        self.disc_params = params
        self.strides = strides
        self.paddings = paddings

    def discriminator(self, input_):
        return discriminator_forward(self.disc_params, input_,
                                     self.strides, self.paddings)

    def __call__(self, input_):
        return self.generator(input_)


if __name__ == "__main__":
    # Config chosen so the final conv reduces to a single voxel per sample.
    channels = (8, 16, 32, 32, 32, 1)
    kernels = ((3, 4, 4), (3, 4, 4), (3, 4, 4), (4, 2, 2), (2, 1, 1), (1, 1, 1))
    strides = ((1, 2, 2), (1, 2, 2), (2, 2, 2), (2, 2, 2), (1, 1, 1), (1, 1, 1))
    paddings = ((1, 1, 1), (1, 1, 1), (1, 1, 1), (1, 0, 0), (0, 0, 0), (0, 0, 0))

    key = jax.random.PRNGKey(0)
    kparams, kx = jax.random.split(key)
    params = init_discriminator_params(kparams, channels, kernels)

    seq_len, batch, H, W = 8, 2, 16, 16
    x = jax.random.normal(kx, (seq_len, batch, 1, H, W), jnp.float32)

    # jit the whole forward so per-layer XLA glue + 6 pallas_calls dispatch as
    # one executable (this workload is launch-latency dominated).
    disc_fwd = jax.jit(
        lambda prm, inp: discriminator_forward(prm, inp, strides, paddings))

    # TODO(synk): the reference DCGAN's generator is an externally injected
    # module with no defined architecture; here the Pallas Discriminator stack
    # serves as the generator callable so DCGAN.forward exercises real compute.
    model = DCGANPallas(
        generator=functools.partial(disc_fwd, params),
        params=params, strides=strides, paddings=paddings,
    )

    out = jax.block_until_ready(model(x))
    assert out.shape == (batch,), out.shape
    assert bool(jnp.all((out >= 0.0) & (out <= 1.0)))
    print("KERNEL_OK")
</pallas_src>

<mosaic_0001>
module attributes {stable_mosaic.version = 11 : i64} {
  func.func @_conv_bn_lrelu_kernel(%arg0: memref<48x1024xbf16, #tpu.memory_space<vmem>>, %arg1: memref<8x48xbf16, #tpu.memory_space<vmem>>, %arg2: memref<8x1xf32, #tpu.memory_space<vmem>>, %arg3: memref<8x1xf32, #tpu.memory_space<vmem>>, %arg4: memref<8x1xf32, #tpu.memory_space<vmem>>, %arg5: memref<8x1024xbf16, #tpu.memory_space<vmem>>) attributes {dimension_semantics = [], scalar_prefetch = 0 : i64, scratch_operands = 0 : i64, tpu.core_type = #tpu.core_type<tc>} {
    %c0 = arith.constant 0 : index
    %c0_0 = arith.constant 0 : index
    %0 = vector.load %arg1[%c0, %c0_0] : memref<8x48xbf16, #tpu.memory_space<vmem>>, vector<8x48xbf16>
    %c0_1 = arith.constant 0 : index
    %c0_2 = arith.constant 0 : index
    %1 = vector.load %arg0[%c0_1, %c0_2] : memref<48x1024xbf16, #tpu.memory_space<vmem>>, vector<48x1024xbf16>
    %cst = arith.constant dense<0.000000e+00> : vector<8x1024xf32>
    %2 = tpu.matmul %0, %1, %cst {dimension_numbers = #tpu.dot_dimension_numbers<[1], [0], [0], [1], [0, 0, 1, 1], [], []>} : vector<8x48xbf16>, vector<48x1024xbf16>, vector<8x1024xf32> -> vector<8x1024xf32>
    %c0_3 = arith.constant 0 : index
    %c0_4 = arith.constant 0 : index
    %3 = vector.load %arg2[%c0_3, %c0_4] : memref<8x1xf32, #tpu.memory_space<vmem>>, vector<8x1xf32>
    %4 = vector.broadcast %3 : vector<8x1xf32> to vector<8x1024xf32>
    %5 = arith.addf %2, %4 : vector<8x1024xf32>
    %cst_5 = arith.constant dense<0.000000e+00> : vector<8xf32>
    %6 = vector.multi_reduction <add>, %5, %cst_5 [1] : vector<8x1024xf32> to vector<8xf32>
    %7 = vector.shape_cast %6 : vector<8xf32> to vector<8x1xf32>
    %cst_6 = arith.constant 1.024000e+03 : f32
    %8 = vector.broadcast %cst_6 : f32 to vector<8x1xf32>
    %9 = arith.divf %7, %8 : vector<8x1xf32>
    %10 = vector.broadcast %9 : vector<8x1xf32> to vector<8x1024xf32>
    %11 = arith.subf %5, %10 : vector<8x1024xf32>
    %12 = arith.mulf %11, %11 : vector<8x1024xf32>
    %cst_7 = arith.constant dense<0.000000e+00> : vector<8xf32>
    %13 = vector.multi_reduction <add>, %12, %cst_7 [1] : vector<8x1024xf32> to vector<8xf32>
    %14 = vector.shape_cast %13 : vector<8xf32> to vector<8x1xf32>
    %cst_8 = arith.constant 1.024000e+03 : f32
    %15 = vector.broadcast %cst_8 : f32 to vector<8x1xf32>
    %16 = arith.divf %14, %15 : vector<8x1xf32>
    %17 = vector.broadcast %9 : vector<8x1xf32> to vector<8x1024xf32>
    %18 = arith.subf %5, %17 : vector<8x1024xf32>
    %c0_9 = arith.constant 0 : index
    %c0_10 = arith.constant 0 : index
    %19 = vector.load %arg3[%c0_9, %c0_10] : memref<8x1xf32, #tpu.memory_space<vmem>>, vector<8x1xf32>
    %cst_11 = arith.constant 9.99999974E-6 : f32
    %20 = vector.broadcast %cst_11 : f32 to vector<8x1xf32>
    %21 = arith.addf %16, %20 : vector<8x1xf32>
    %22 = math.rsqrt %21 : vector<8x1xf32>
    %23 = arith.mulf %19, %22 : vector<8x1xf32>
    %24 = vector.broadcast %23 : vector<8x1xf32> to vector<8x1024xf32>
    %25 = arith.mulf %18, %24 : vector<8x1024xf32>
    %c0_12 = arith.constant 0 : index
    %c0_13 = arith.constant 0 : index
    %26 = vector.load %arg4[%c0_12, %c0_13] : memref<8x1xf32, #tpu.memory_space<vmem>>, vector<8x1xf32>
    %27 = vector.broadcast %26 : vector<8x1xf32> to vector<8x1024xf32>
    %28 = arith.addf %25, %27 : vector<8x1024xf32>
    %cst_14 = arith.constant 0.000000e+00 : f32
    %29 = vector.broadcast %cst_14 : f32 to vector<8x1024xf32>
    %30 = arith.cmpf oge, %28, %29 : vector<8x1024xf32>
    %cst_15 = arith.constant 2.000000e-01 : f32
    %31 = vector.broadcast %cst_15 : f32 to vector<8x1024xf32>
    %32 = arith.mulf %31, %28 : vector<8x1024xf32>
    %33 = arith.select %30, %28, %32 : vector<8x1024xi1>, vector<8x1024xf32>
    %34 = arith.truncf %33 : vector<8x1024xf32> to vector<8x1024xbf16>
    %c0_16 = arith.constant 0 : index
    %c0_17 = arith.constant 0 : index
    %35 = vector.load %arg5[%c0_16, %c0_17] : memref<8x1024xbf16, #tpu.memory_space<vmem>>, vector<8x1024xbf16>
    tpu.vector_store %arg5[%c0_16, %c0_17], %34 {strides = array<i32>} : memref<8x1024xbf16, #tpu.memory_space<vmem>>, vector<8x1024xbf16>,
    return
  }
}

module attributes {stable_mosaic.version = 11 : i64} {
  func.func @_conv_bn_lrelu_kernel(%arg0: memref<384x256xbf16, #tpu.memory_space<vmem>>, %arg1: memref<16x384xbf16, #tpu.memory_space<vmem>>, %arg2: memref<16x1xf32, #tpu.memory_space<vmem>>, %arg3: memref<16x1xf32, #tpu.memory_space<vmem>>, %arg4: memref<16x1xf32, #tpu.memory_space<vmem>>, %arg5: memref<16x256xbf16, #tpu.memory_space<vmem>>) attributes {dimension_semantics = [], scalar_prefetch = 0 : i64, scratch_operands = 0 : i64, tpu.core_type = #tpu.core_type<tc>} {
    %c0 = arith.constant 0 : index
    %c0_0 = arith.constant 0 : index
    %0 = vector.load %arg1[%c0, %c0_0] : memref<16x384xbf16, #tpu.memory_space<vmem>>, vector<16x384xbf16>
    %c0_1 = arith.constant 0 : index
    %c0_2 = arith.constant 0 : index
    %1 = vector.load %arg0[%c0_1, %c0_2] : memref<384x256xbf16, #tpu.memory_space<vmem>>, vector<384x256xbf16>
    %cst = arith.constant dense<0.000000e+00> : vector<16x256xf32>
    %2 = tpu.matmul %0, %1, %cst {dimension_numbers = #tpu.dot_dimension_numbers<[1], [0], [0], [1], [0, 0, 1, 1], [], []>} : vector<16x384xbf16>, vector<384x256xbf16>, vector<16x256xf32> -> vector<16x256xf32>
    %c0_3 = arith.constant 0 : index
    %c0_4 = arith.constant 0 : index
    %3 = vector.load %arg2[%c0_3, %c0_4] : memref<16x1xf32, #tpu.memory_space<vmem>>, vector<16x1xf32>
    %4 = vector.broadcast %3 : vector<16x1xf32> to vector<16x256xf32>
    %5 = arith.addf %2, %4 : vector<16x256xf32>
    %cst_5 = arith.constant dense<0.000000e+00> : vector<16xf32>
    %6 = vector.multi_reduction <add>, %5, %cst_5 [1] : vector<16x256xf32> to vector<16xf32>
    %7 = vector.shape_cast %6 : vector<16xf32> to vector<16x1xf32>
    %cst_6 = arith.constant 2.560000e+02 : f32
    %8 = vector.broadcast %cst_6 : f32 to vector<16x1xf32>
    %9 = arith.divf %7, %8 : vector<16x1xf32>
    %10 = vector.broadcast %9 : vector<16x1xf32> to vector<16x256xf32>
    %11 = arith.subf %5, %10 : vector<16x256xf32>
    %12 = arith.mulf %11, %11 : vector<16x256xf32>
    %cst_7 = arith.constant dense<0.000000e+00> : vector<16xf32>
    %13 = vector.multi_reduction <add>, %12, %cst_7 [1] : vector<16x256xf32> to vector<16xf32>
    %14 = vector.shape_cast %13 : vector<16xf32> to vector<16x1xf32>
    %cst_8 = arith.constant 2.560000e+02 : f32
    %15 = vector.broadcast %cst_8 : f32 to vector<16x1xf32>
    %16 = arith.divf %14, %15 : vector<16x1xf32>
    %17 = vector.broadcast %9 : vector<16x1xf32> to vector<16x256xf32>
    %18 = arith.subf %5, %17 : vector<16x256xf32>
    %c0_9 = arith.constant 0 : index
    %c0_10 = arith.constant 0 : index
    %19 = vector.load %arg3[%c0_9, %c0_10] : memref<16x1xf32, #tpu.memory_space<vmem>>, vector<16x1xf32>
    %cst_11 = arith.constant 9.99999974E-6 : f32
    %20 = vector.broadcast %cst_11 : f32 to vector<16x1xf32>
    %21 = arith.addf %16, %20 : vector<16x1xf32>
    %22 = math.rsqrt %21 : vector<16x1xf32>
    %23 = arith.mulf %19, %22 : vector<16x1xf32>
    %24 = vector.broadcast %23 : vector<16x1xf32> to vector<16x256xf32>
    %25 = arith.mulf %18, %24 : vector<16x256xf32>
    %c0_12 = arith.constant 0 : index
    %c0_13 = arith.constant 0 : index
    %26 = vector.load %arg4[%c0_12, %c0_13] : memref<16x1xf32, #tpu.memory_space<vmem>>, vector<16x1xf32>
    %27 = vector.broadcast %26 : vector<16x1xf32> to vector<16x256xf32>
    %28 = arith.addf %25, %27 : vector<16x256xf32>
    %cst_14 = arith.constant 0.000000e+00 : f32
    %29 = vector.broadcast %cst_14 : f32 to vector<16x256xf32>
    %30 = arith.cmpf oge, %28, %29 : vector<16x256xf32>
    %cst_15 = arith.constant 2.000000e-01 : f32
    %31 = vector.broadcast %cst_15 : f32 to vector<16x256xf32>
    %32 = arith.mulf %31, %28 : vector<16x256xf32>
    %33 = arith.select %30, %28, %32 : vector<16x256xi1>, vector<16x256xf32>
    %34 = arith.truncf %33 : vector<16x256xf32> to vector<16x256xbf16>
    %c0_16 = arith.constant 0 : index
    %c0_17 = arith.constant 0 : index
    %35 = vector.load %arg5[%c0_16, %c0_17] : memref<16x256xbf16, #tpu.memory_space<vmem>>, vector<16x256xbf16>
    tpu.vector_store %arg5[%c0_16, %c0_17], %34 {strides = array<i32>} : memref<16x256xbf16, #tpu.memory_space<vmem>>, vector<16x256xbf16>,
    return
  }
}

module attributes {stable_mosaic.version = 11 : i64} {
  func.func @_conv_bn_lrelu_kernel(%arg0: memref<768x32xbf16, #tpu.memory_space<vmem>>, %arg1: memref<32x768xbf16, #tpu.memory_space<vmem>>, %arg2: memref<32x1xf32, #tpu.memory_space<vmem>>, %arg3: memref<32x1xf32, #tpu.memory_space<vmem>>, %arg4: memref<32x1xf32, #tpu.memory_space<vmem>>, %arg5: memref<32x32xbf16, #tpu.memory_space<vmem>>) attributes {dimension_semantics = [], scalar_prefetch = 0 : i64, scratch_operands = 0 : i64, tpu.core_type = #tpu.core_type<tc>} {
    %c0 = arith.constant 0 : index
    %c0_0 = arith.constant 0 : index
    %0 = vector.load %arg1[%c0, %c0_0] : memref<32x768xbf16, #tpu.memory_space<vmem>>, vector<32x768xbf16>
    %c0_1 = arith.constant 0 : index
    %c0_2 = arith.constant 0 : index
    %1 = vector.load %arg0[%c0_1, %c0_2] : memref<768x32xbf16, #tpu.memory_space<vmem>>, vector<768x32xbf16>
    %cst = arith.constant dense<0.000000e+00> : vector<32x32xf32>
    %2 = tpu.matmul %0, %1, %cst {dimension_numbers = #tpu.dot_dimension_numbers<[1], [0], [0], [1], [0, 0, 1, 1], [], []>} : vector<32x768xbf16>, vector<768x32xbf16>, vector<32x32xf32> -> vector<32x32xf32>
    %c0_3 = arith.constant 0 : index
    %c0_4 = arith.constant 0 : index
    %3 = vector.load %arg2[%c0_3, %c0_4] : memref<32x1xf32, #tpu.memory_space<vmem>>, vector<32x1xf32>
    %4 = vector.broadcast %3 : vector<32x1xf32> to vector<32x32xf32>
    %5 = arith.addf %2, %4 : vector<32x32xf32>
    %cst_5 = arith.constant dense<0.000000e+00> : vector<32xf32>
    %6 = vector.multi_reduction <add>, %5, %cst_5 [1] : vector<32x32xf32> to vector<32xf32>
    %7 = vector.shape_cast %6 : vector<32xf32> to vector<32x1xf32>
    %cst_6 = arith.constant 3.200000e+01 : f32
    %8 = vector.broadcast %cst_6 : f32 to vector<32x1xf32>
    %9 = arith.divf %7, %8 : vector<32x1xf32>
    %10 = vector.broadcast %9 : vector<32x1xf32> to vector<32x32xf32>
    %11 = arith.subf %5, %10 : vector<32x32xf32>
    %12 = arith.mulf %11, %11 : vector<32x32xf32>
    %cst_7 = arith.constant dense<0.000000e+00> : vector<32xf32>
    %13 = vector.multi_reduction <add>, %12, %cst_7 [1] : vector<32x32xf32> to vector<32xf32>
    %14 = vector.shape_cast %13 : vector<32xf32> to vector<32x1xf32>
    %cst_8 = arith.constant 3.200000e+01 : f32
    %15 = vector.broadcast %cst_8 : f32 to vector<32x1xf32>
    %16 = arith.divf %14, %15 : vector<32x1xf32>
    %17 = vector.broadcast %9 : vector<32x1xf32> to vector<32x32xf32>
    %18 = arith.subf %5, %17 : vector<32x32xf32>
    %c0_9 = arith.constant 0 : index
    %c0_10 = arith.constant 0 : index
    %19 = vector.load %arg3[%c0_9, %c0_10] : memref<32x1xf32, #tpu.memory_space<vmem>>, vector<32x1xf32>
    %cst_11 = arith.constant 9.99999974E-6 : f32
    %20 = vector.broadcast %cst_11 : f32 to vector<32x1xf32>
    %21 = arith.addf %16, %20 : vector<32x1xf32>
    %22 = math.rsqrt %21 : vector<32x1xf32>
    %23 = arith.mulf %19, %22 : vector<32x1xf32>
    %24 = vector.broadcast %23 : vector<32x1xf32> to vector<32x32xf32>
    %25 = arith.mulf %18, %24 : vector<32x32xf32>
    %c0_12 = arith.constant 0 : index
    %c0_13 = arith.constant 0 : index
    %26 = vector.load %arg4[%c0_12, %c0_13] : memref<32x1xf32, #tpu.memory_space<vmem>>, vector<32x1xf32>
    %27 = vector.broadcast %26 : vector<32x1xf32> to vector<32x32xf32>
    %28 = arith.addf %25, %27 : vector<32x32xf32>
    %cst_14 = arith.constant 0.000000e+00 : f32
    %29 = vector.broadcast %cst_14 : f32 to vector<32x32xf32>
    %30 = arith.cmpf oge, %28, %29 : vector<32x32xf32>
    %cst_15 = arith.constant 2.000000e-01 : f32
    %31 = vector.broadcast %cst_15 : f32 to vector<32x32xf32>
    %32 = arith.mulf %31, %28 : vector<32x32xf32>
    %33 = arith.select %30, %28, %32 : vector<32x32xi1>, vector<32x32xf32>
    %34 = arith.truncf %33 : vector<32x32xf32> to vector<32x32xbf16>
    %c0_16 = arith.constant 0 : index
    %c0_17 = arith.constant 0 : index
    %35 = vector.load %arg5[%c0_16, %c0_17] : memref<32x32xbf16, #tpu.memory_space<vmem>>, vector<32x32xbf16>
    tpu.vector_store %arg5[%c0_16, %c0_17], %34 {strides = array<i32>} : memref<32x32xbf16, #tpu.memory_space<vmem>>, vector<32x32xbf16>,
    return
  }
}

module attributes {stable_mosaic.version = 11 : i64} {
  func.func @_conv_bn_lrelu_kernel(%arg0: memref<512x4xbf16, #tpu.memory_space<vmem>>, %arg1: memref<32x512xbf16, #tpu.memory_space<vmem>>, %arg2: memref<32x1xf32, #tpu.memory_space<vmem>>, %arg3: memref<32x1xf32, #tpu.memory_space<vmem>>, %arg4: memref<32x1xf32, #tpu.memory_space<vmem>>, %arg5: memref<32x4xbf16, #tpu.memory_space<vmem>>) attributes {dimension_semantics = [], scalar_prefetch = 0 : i64, scratch_operands = 0 : i64, tpu.core_type = #tpu.core_type<tc>} {
    %c0 = arith.constant 0 : index
    %c0_0 = arith.constant 0 : index
    %0 = vector.load %arg1[%c0, %c0_0] : memref<32x512xbf16, #tpu.memory_space<vmem>>, vector<32x512xbf16>
    %c0_1 = arith.constant 0 : index
    %c0_2 = arith.constant 0 : index
    %1 = vector.load %arg0[%c0_1, %c0_2] : memref<512x4xbf16, #tpu.memory_space<vmem>>, vector<512x4xbf16>
    %cst = arith.constant dense<0.000000e+00> : vector<32x4xf32>
    %2 = tpu.matmul %0, %1, %cst {dimension_numbers = #tpu.dot_dimension_numbers<[1], [0], [0], [1], [0, 0, 1, 1], [], []>} : vector<32x512xbf16>, vector<512x4xbf16>, vector<32x4xf32> -> vector<32x4xf32>
    %c0_3 = arith.constant 0 : index
    %c0_4 = arith.constant 0 : index
    %3 = vector.load %arg2[%c0_3, %c0_4] : memref<32x1xf32, #tpu.memory_space<vmem>>, vector<32x1xf32>
    %4 = vector.broadcast %3 : vector<32x1xf32> to vector<32x4xf32>
    %5 = arith.addf %2, %4 : vector<32x4xf32>
    %cst_5 = arith.constant dense<0.000000e+00> : vector<32xf32>
    %6 = vector.multi_reduction <add>, %5, %cst_5 [1] : vector<32x4xf32> to vector<32xf32>
    %7 = vector.shape_cast %6 : vector<32xf32> to vector<32x1xf32>
    %cst_6 = arith.constant 4.000000e+00 : f32
    %8 = vector.broadcast %cst_6 : f32 to vector<32x1xf32>
    %9 = arith.divf %7, %8 : vector<32x1xf32>
    %10 = vector.broadcast %9 : vector<32x1xf32> to vector<32x4xf32>
    %11 = arith.subf %5, %10 : vector<32x4xf32>
    %12 = arith.mulf %11, %11 : vector<32x4xf32>
    %cst_7 = arith.constant dense<0.000000e+00> : vector<32xf32>
    %13 = vector.multi_reduction <add>, %12, %cst_7 [1] : vector<32x4xf32> to vector<32xf32>
    %14 = vector.shape_cast %13 : vector<32xf32> to vector<32x1xf32>
    %cst_8 = arith.constant 4.000000e+00 : f32
    %15 = vector.broadcast %cst_8 : f32 to vector<32x1xf32>
    %16 = arith.divf %14, %15 : vector<32x1xf32>
    %17 = vector.broadcast %9 : vector<32x1xf32> to vector<32x4xf32>
    %18 = arith.subf %5, %17 : vector<32x4xf32>
    %c0_9 = arith.constant 0 : index
    %c0_10 = arith.constant 0 : index
    %19 = vector.load %arg3[%c0_9, %c0_10] : memref<32x1xf32, #tpu.memory_space<vmem>>, vector<32x1xf32>
    %cst_11 = arith.constant 9.99999974E-6 : f32
    %20 = vector.broadcast %cst_11 : f32 to vector<32x1xf32>
    %21 = arith.addf %16, %20 : vector<32x1xf32>
    %22 = math.rsqrt %21 : vector<32x1xf32>
    %23 = arith.mulf %19, %22 : vector<32x1xf32>
    %24 = vector.broadcast %23 : vector<32x1xf32> to vector<32x4xf32>
    %25 = arith.mulf %18, %24 : vector<32x4xf32>
    %c0_12 = arith.constant 0 : index
    %c0_13 = arith.constant 0 : index
    %26 = vector.load %arg4[%c0_12, %c0_13] : memref<32x1xf32, #tpu.memory_space<vmem>>, vector<32x1xf32>
    %27 = vector.broadcast %26 : vector<32x1xf32> to vector<32x4xf32>
    %28 = arith.addf %25, %27 : vector<32x4xf32>
    %cst_14 = arith.constant 0.000000e+00 : f32
    %29 = vector.broadcast %cst_14 : f32 to vector<32x4xf32>
    %30 = arith.cmpf oge, %28, %29 : vector<32x4xf32>
    %cst_15 = arith.constant 2.000000e-01 : f32
    %31 = vector.broadcast %cst_15 : f32 to vector<32x4xf32>
    %32 = arith.mulf %31, %28 : vector<32x4xf32>
    %33 = arith.select %30, %28, %32 : vector<32x4xi1>, vector<32x4xf32>
    %34 = arith.truncf %33 : vector<32x4xf32> to vector<32x4xbf16>
    %c0_16 = arith.constant 0 : index
    %c0_17 = arith.constant 0 : index
    %35 = vector.load %arg5[%c0_16, %c0_17] : memref<32x4xbf16, #tpu.memory_space<vmem>>, vector<32x4xbf16>
    tpu.vector_store %arg5[%c0_16, %c0_17], %34 {strides = array<i32>} : memref<32x4xbf16, #tpu.memory_space<vmem>>, vector<32x4xbf16>,
    return
  }
}

module attributes {stable_mosaic.version = 11 : i64} {
  func.func @_conv_bn_lrelu_kernel(%arg0: memref<64x2xbf16, #tpu.memory_space<vmem>>, %arg1: memref<32x64xbf16, #tpu.memory_space<vmem>>, %arg2: memref<32x1xf32, #tpu.memory_space<vmem>>, %arg3: memref<32x1xf32, #tpu.memory_space<vmem>>, %arg4: memref<32x1xf32, #tpu.memory_space<vmem>>, %arg5: memref<32x2xbf16, #tpu.memory_space<vmem>>) attributes {dimension_semantics = [], scalar_prefetch = 0 : i64, scratch_operands = 0 : i64, tpu.core_type = #tpu.core_type<tc>} {
    %c0 = arith.constant 0 : index
    %c0_0 = arith.constant 0 : index
    %0 = vector.load %arg1[%c0, %c0_0] : memref<32x64xbf16, #tpu.memory_space<vmem>>, vector<32x64xbf16>
    %c0_1 = arith.constant 0 : index
    %c0_2 = arith.constant 0 : index
    %1 = vector.load %arg0[%c0_1, %c0_2] : memref<64x2xbf16, #tpu.memory_space<vmem>>, vector<64x2xbf16>
    %cst = arith.constant dense<0.000000e+00> : vector<32x2xf32>
    %2 = tpu.matmul %0, %1, %cst {dimension_numbers = #tpu.dot_dimension_numbers<[1], [0], [0], [1], [0, 0, 1, 1], [], []>} : vector<32x64xbf16>, vector<64x2xbf16>, vector<32x2xf32> -> vector<32x2xf32>
    %c0_3 = arith.constant 0 : index
    %c0_4 = arith.constant 0 : index
    %3 = vector.load %arg2[%c0_3, %c0_4] : memref<32x1xf32, #tpu.memory_space<vmem>>, vector<32x1xf32>
    %4 = vector.broadcast %3 : vector<32x1xf32> to vector<32x2xf32>
    %5 = arith.addf %2, %4 : vector<32x2xf32>
    %cst_5 = arith.constant dense<0.000000e+00> : vector<32xf32>
    %6 = vector.multi_reduction <add>, %5, %cst_5 [1] : vector<32x2xf32> to vector<32xf32>
    %7 = vector.shape_cast %6 : vector<32xf32> to vector<32x1xf32>
    %cst_6 = arith.constant 2.000000e+00 : f32
    %8 = vector.broadcast %cst_6 : f32 to vector<32x1xf32>
    %9 = arith.divf %7, %8 : vector<32x1xf32>
    %10 = vector.broadcast %9 : vector<32x1xf32> to vector<32x2xf32>
    %11 = arith.subf %5, %10 : vector<32x2xf32>
    %12 = arith.mulf %11, %11 : vector<32x2xf32>
    %cst_7 = arith.constant dense<0.000000e+00> : vector<32xf32>
    %13 = vector.multi_reduction <add>, %12, %cst_7 [1] : vector<32x2xf32> to vector<32xf32>
    %14 = vector.shape_cast %13 : vector<32xf32> to vector<32x1xf32>
    %cst_8 = arith.constant 2.000000e+00 : f32
    %15 = vector.broadcast %cst_8 : f32 to vector<32x1xf32>
    %16 = arith.divf %14, %15 : vector<32x1xf32>
    %17 = vector.broadcast %9 : vector<32x1xf32> to vector<32x2xf32>
    %18 = arith.subf %5, %17 : vector<32x2xf32>
    %c0_9 = arith.constant 0 : index
    %c0_10 = arith.constant 0 : index
    %19 = vector.load %arg3[%c0_9, %c0_10] : memref<32x1xf32, #tpu.memory_space<vmem>>, vector<32x1xf32>
    %cst_11 = arith.constant 9.99999974E-6 : f32
    %20 = vector.broadcast %cst_11 : f32 to vector<32x1xf32>
    %21 = arith.addf %16, %20 : vector<32x1xf32>
    %22 = math.rsqrt %21 : vector<32x1xf32>
    %23 = arith.mulf %19, %22 : vector<32x1xf32>
    %24 = vector.broadcast %23 : vector<32x1xf32> to vector<32x2xf32>
    %25 = arith.mulf %18, %24 : vector<32x2xf32>
    %c0_12 = arith.constant 0 : index
    %c0_13 = arith.constant 0 : index
    %26 = vector.load %arg4[%c0_12, %c0_13] : memref<32x1xf32, #tpu.memory_space<vmem>>, vector<32x1xf32>
    %27 = vector.broadcast %26 : vector<32x1xf32> to vector<32x2xf32>
    %28 = arith.addf %25, %27 : vector<32x2xf32>
    %cst_14 = arith.constant 0.000000e+00 : f32
    %29 = vector.broadcast %cst_14 : f32 to vector<32x2xf32>
    %30 = arith.cmpf oge, %28, %29 : vector<32x2xf32>
    %cst_15 = arith.constant 2.000000e-01 : f32
    %31 = vector.broadcast %cst_15 : f32 to vector<32x2xf32>
    %32 = arith.mulf %31, %28 : vector<32x2xf32>
    %33 = arith.select %30, %28, %32 : vector<32x2xi1>, vector<32x2xf32>
    %34 = arith.truncf %33 : vector<32x2xf32> to vector<32x2xbf16>
    %c0_16 = arith.constant 0 : index
    %c0_17 = arith.constant 0 : index
    %35 = vector.load %arg5[%c0_16, %c0_17] : memref<32x2xbf16, #tpu.memory_space<vmem>>, vector<32x2xbf16>
    tpu.vector_store %arg5[%c0_16, %c0_17], %34 {strides = array<i32>} : memref<32x2xbf16, #tpu.memory_space<vmem>>, vector<32x2xbf16>,
    return
  }
}

module attributes {stable_mosaic.version = 11 : i64} {
  func.func @_conv_sigmoid_kernel(%arg0: memref<32x2xbf16, #tpu.memory_space<vmem>>, %arg1: memref<1x32xbf16, #tpu.memory_space<vmem>>, %arg2: memref<1x1xf32, #tpu.memory_space<vmem>>, %arg3: memref<1x2xf32, #tpu.memory_space<vmem>>) attributes {dimension_semantics = [], scalar_prefetch = 0 : i64, scratch_operands = 0 : i64, tpu.core_type = #tpu.core_type<tc>} {
    %c0 = arith.constant 0 : index
    %c0_0 = arith.constant 0 : index
    %0 = vector.load %arg1[%c0, %c0_0] : memref<1x32xbf16, #tpu.memory_space<vmem>>, vector<1x32xbf16>
    %c0_1 = arith.constant 0 : index
    %c0_2 = arith.constant 0 : index
    %1 = vector.load %arg0[%c0_1, %c0_2] : memref<32x2xbf16, #tpu.memory_space<vmem>>, vector<32x2xbf16>
    %cst = arith.constant dense<0.000000e+00> : vector<1x2xf32>
    %2 = tpu.matmul %0, %1, %cst {dimension_numbers = #tpu.dot_dimension_numbers<[1], [0], [0], [1], [0, 0, 1, 1], [], []>} : vector<1x32xbf16>, vector<32x2xbf16>, vector<1x2xf32> -> vector<1x2xf32>
    %c0_3 = arith.constant 0 : index
    %c0_4 = arith.constant 0 : index
    %3 = vector.load %arg2[%c0_3, %c0_4] : memref<1x1xf32, #tpu.memory_space<vmem>>, vector<1x1xf32>
    %4 = vector.broadcast %3 : vector<1x1xf32> to vector<1x2xf32>
    %5 = arith.addf %2, %4 : vector<1x2xf32>
    %6 = arith.negf %5 : vector<1x2xf32>
    %7 = math.exp %6 : vector<1x2xf32>
    %cst_5 = arith.constant 1.000000e+00 : f32
    %8 = vector.broadcast %cst_5 : f32 to vector<1x2xf32>
    %9 = arith.addf %8, %7 : vector<1x2xf32>
    %10 = arith.divf %8, %9 : vector<1x2xf32>
    %c0_6 = arith.constant 0 : index
    %c0_7 = arith.constant 0 : index
    %11 = vector.load %arg3[%c0_6, %c0_7] : memref<1x2xf32, #tpu.memory_space<vmem>>, vector<1x2xf32>
    tpu.vector_store %arg3[%c0_6, %c0_7], %10 {strides = array<i32>} : memref<1x2xf32, #tpu.memory_space<vmem>>, vector<1x2xf32>,
    return
  }
}

</mosaic_0001>

<bundles_post_ra>
// kernel: _lambda_.6
= control target key start
LH: loop header
LB: loop body
LE: loop exit
PB: predicated region body
PF: predicated region fallthrough
CT: control target
= control target key end

     0   :  { %v536_v3 = vmov 0   ;;  %vm172_vm0 = vcmask 392192   ;;  %s752_s0 = inlined_call_operand.vmem [shape: bf16[48,1024], index: 0, kind: input, shape index: {}]   ;;  %s753_s1 = inlined_call_operand.vmem [shape: bf16[8,48], index: 1, kind: input, shape index: {}]   ;;  %s754_s2 = inlined_call_operand.vmem [shape: f32[8,1], index: 2, kind: input, shape index: {}]   ;;  %s755_s4 = inlined_call_operand.vmem [shape: f32[8,1], index: 4, kind: input, shape index: {}]   ;;  %s756_s3 = inlined_call_operand.vmem [shape: f32[8,1], index: 3, kind: input, shape index: {}]   ;;  %s757_s5 = inlined_call_operand.vmem [shape: bf16[8,1024], index: 5, kind: output, shape index: {}]  }
   0x1   :  { %v465_v0 = vld [vmem:[%s752_s0 + $0x80] sm:$0xf]  ;;  %v519_v2 = vld [vmem:[%s752_s0 + $0x84] sm:$0xf]  ;;  %529 = vset.pattern.permute.xlu0 %v536_v3  ;;  %530 = vset.pattern.permute.xlu1 %v536_v3  ;;  %v473_v6 = vld [vmem:[%s752_s0 + $0x88] sm:$0xf] }
   0x2   :  { %v523_v1 = vld [vmem:[%s752_s0 + $0x9c] sm:$0xf0]  ;;  %v467_v5 = vld [vmem:[%s752_s0 + $0xa0] sm:$0xf0]  ;;  %v524_v7 = vld [vmem:[%s752_s0 + $0xa4] sm:$0xf0]  ;;  %531 = vset.pattern.permute.xlu2 %v536_v3 }
   0x3   :  { %v466_v4 = vor.u32 %v523_v1, %v465_v0  ;;  %v470_v8 = vor.u32 %v519_v2, %v467_v5  ;;  %v474_v9 = vor.u32 %v524_v7, %v473_v6  ;;  %v520_v10 = vld [vmem:[%s752_s0 + $0x8c] sm:$0xf]  ;;  %v433_v12 = vld [vmem:[%s752_s0 + $0x40] sm:$0xf]  ;;  %v511_v15 = vld [vmem:[%s752_s0 + $0x44] sm:$0xf] }
   0x4   :  { %v475_v11 = vld [vmem:[%s752_s0 + $0xa8] sm:$0xf0]  ;;  %v515_v14 = vld [vmem:[%s752_s0 + $0x5c] sm:$0xf0]  ;;  %v435_v16 = vld [vmem:[%s752_s0 + $0x60] sm:$0xf0] }
   0x5   :  { %181 = vmatpush.bf16.msra.mxu0 %v466_v4  ;;  %v478_v13 = vor.u32 %v520_v10, %v475_v11  ;;  %194 = vmatpush.bf16.msra.mxu1 %v470_v8  ;;  %v434_v17 = vor.u32 %v515_v14, %v433_v12  ;;  %v438_v18 = vor.u32 %v511_v15, %v435_v16  ;;  %v441_v19 = vld [vmem:[%s752_s0 + $0x48] sm:$0xf]  ;;  %v512_v21 = vld [vmem:[%s752_s0 + $0x4c] sm:$0xf]  ;;  %v401_v24 = vld [vmem:[%s752_s0] sm:$0xf] }
   0x6   :  { %207 = vmatpush.bf16.msra.mxu2 %v474_v9  ;;  %v516_v20 = vld [vmem:[%s752_s0 + $0x64] sm:$0xf0]  ;;  %v443_v23 = vld [vmem:[%s752_s0 + $0x68] sm:$0xf0]  ;;  %v507_v25 = vld [vmem:[%s752_s0 + $0x1c] sm:$0xf0] }
   0x7   :  { %220 = vmatpush.bf16.msra.mxu3 %v478_v13  ;;  %v442_v22 = vor.u32 %v516_v20, %v441_v19  ;;  %v446_v26 = vor.u32 %v512_v21, %v443_v23  ;;  %v503_v27 = vld [vmem:[%s752_s0 + $0x4] sm:$0xf]  ;;  %v409_v29 = vld [vmem:[%s752_s0 + $0x8] sm:$0xf]  ;;  %v402_v30 = vor.u32 %v507_v25, %v401_v24  ;;  %v504_v32 = vld [vmem:[%s752_s0 + $0xc] sm:$0xf] }
   0x8   :  { %v403_v28 = vld [vmem:[%s752_s0 + $0x20] sm:$0xf0]  ;;  %v508_v31 = vld [vmem:[%s752_s0 + $0x24] sm:$0xf0]  ;;  %v411_v33 = vld [vmem:[%s752_s0 + $0x28] sm:$0xf0] }
   0x9   :  { %182 = vmatpush.bf16.msra.mxu0 %v434_v17  ;;  %195 = vmatpush.bf16.msra.mxu1 %v438_v18  ;;  %v406_v34 = vor.u32 %v503_v27, %v403_v28  ;;  %v410_v35 = vor.u32 %v508_v31, %v409_v29  ;;  %v489_v36 = vld [vmem:[%s752_s0 + $0x98] sm:$0xf]  ;;  %v414_v38 = vor.u32 %v504_v32, %v411_v33  ;;  %v481_v40 = vld [vmem:[%s752_s0 + $0x90] sm:$0xf]  ;;  %v522_v42 = vld [vmem:[%s752_s0 + $0x9c] sm:$0xf] }
   0xa   :  { %208 = vmatpush.bf16.msra.mxu2 %v442_v22  ;;  %v526_v37 = vld [vmem:[%s752_s0 + $0xb4] sm:$0xf0]  ;;  %v525_v41 = vld [vmem:[%s752_s0 + $0xac] sm:$0xf0]  ;;  %v491_v43 = vld [vmem:[%s752_s0 + $0xb8] sm:$0xf0] }
   0xb   :  { %221 = vmatpush.bf16.msra.mxu3 %v446_v26  ;;  %v490_v39 = vor.u32 %v526_v37, %v489_v36  ;;  %v521_v44 = vld [vmem:[%s752_s0 + $0x94] sm:$0xf]  ;;  %v21_v46 = vld [vmem:[%s753_s1] sm:$0xf]  ;;  %v494_v47 = vor.u32 %v522_v42, %v491_v43  ;;  %v457_v48 = vld [vmem:[%s752_s0 + $0x58] sm:$0xf]  ;;  %v482_v50 = vor.u32 %v525_v41, %v481_v40 }
   0xc   :  { %v483_v45 = vld [vmem:[%s752_s0 + $0xb0] sm:$0xf0]  ;;  %v518_v49 = vld [vmem:[%s752_s0 + $0x74] sm:$0xf0]  ;;  %v514_v51 = vld [vmem:[%s752_s0 + $0x5c] sm:$0xf] }
   0xd   :  { %183 = vmatpush.bf16.msra.mxu0 %v402_v30  ;;  %196 = vmatpush.bf16.msra.mxu1 %v406_v34  ;;  %v459_v52 = vld [vmem:[%s752_s0 + $0x78] sm:$0xf0]  ;;  %v486_v53 = vor.u32 %v521_v44, %v483_v45  ;;  %v458_v54 = vor.u32 %v518_v49, %v457_v48  ;;  %v449_v55 = vld [vmem:[%s752_s0 + $0x50] sm:$0xf]  ;;  %v513_v57 = vld [vmem:[%s752_s0 + $0x54] sm:$0xf] }
   0xe   :  { %209 = vmatpush.bf16.msra.mxu2 %v410_v35  ;;  %v517_v56 = vld [vmem:[%s752_s0 + $0x6c] sm:$0xf0]  ;;  %v462_v58 = vor.u32 %v514_v51, %v459_v52  ;;  %v451_v59 = vld [vmem:[%s752_s0 + $0x70] sm:$0xf0]  ;;  %v425_v60 = vld [vmem:[%s752_s0 + $0x18] sm:$0xf] }
   0xf   :  { %222 = vmatpush.bf16.msra.mxu3 %v414_v38  ;;  %v510_v61 = vld [vmem:[%s752_s0 + $0x34] sm:$0xf0]  ;;  %v46_v62 = vld [vmem:[%s754_s2] sm:$0xff]  ;;  %v450_v63 = vor.u32 %v517_v56, %v449_v55  ;;  %v506_v0 = vld [vmem:[%s752_s0 + $0x1c] sm:$0xf]  ;;  %v454_v2 = vor.u32 %v513_v57, %v451_v59  ;;  %v537_v43 = vmov 1024.0  }
  0x10   :  { %495 = vmatmul.msk.bf16.vlgmr.msra.gmra.mxu0 %vm172_vm0, %v21_v46  ;;  %496 = vmatmul.msk.bf16.vlgmr.msra.gmra.mxu1 %vm172_vm0, %v21_v46  ;;  %v427_v1 = vld [vmem:[%s752_s0 + $0x38] sm:$0xf0]  ;;  %v426_v3 = vor.u32 %v510_v61, %v425_v60  ;;  %v417_v4 = vld [vmem:[%s752_s0 + $0x10] sm:$0xf]  ;;  %v505_v6 = vld [vmem:[%s752_s0 + $0x14] sm:$0xf]  ;;  %532 = vrcp.f32 %v537_v43 }
  0x11   :  { %497 = vmatmul.msk.bf16.vlgmr.msra.gmra.mxu2 %vm172_vm0, %v21_v46  ;;  %233 = vmatpush.bf16.msrb.mxu0 %v482_v50  ;;  %v509_v5 = vld [vmem:[%s752_s0 + $0x2c] sm:$0xf0]  ;;  %v419_v7 = vld [vmem:[%s752_s0 + $0x30] sm:$0xf0]  ;;  %v430_v8 = vor.u32 %v506_v0, %v427_v1 }
  0x12   :  { %259 = vmatpush.bf16.msrb.mxu2 %v490_v39  ;;  %498 = vmatmul.msk.bf16.vlgmr.msra.gmra.mxu3 %vm172_vm0, %v21_v46  ;;  %v418_v9 = vor.u32 %v509_v5, %v417_v4  ;;  %v422_v10 = vor.u32 %v505_v6, %v419_v7 }
  0x13   :  { %272 = vmatpush.bf16.msrb.mxu3 %v494_v47  ;;  %246 = vmatpush.bf16.msrb.mxu1 %v486_v53 }
  0x14   :  { %49 = vperm.xlu0 %529, %v46_v62  }
  0x15   :  { %234 = vmatpush.bf16.msrb.mxu0 %v450_v63 }
  0x16   :  { %260 = vmatpush.bf16.msrb.mxu2 %v458_v54  ;;  %v533_v44 = vpop.eup %532 }
  0x17   :  { %273 = vmatpush.bf16.msrb.mxu3 %v462_v58  ;;  %247 = vmatpush.bf16.msrb.mxu1 %v454_v2  ;;  %v290_v45 = vmul.f32 1024.0, %v533_v44  ;;  %vm294_vm1 = vweird.f32 %v533_v44 }
  0x19   :  { %235 = vmatpush.bf16.msrb.mxu0 %v418_v9 }
  0x1a   :  { %261 = vmatpush.bf16.msrb.mxu2 %v426_v3 }
  0x1b   :  { %274 = vmatpush.bf16.msrb.mxu3 %v430_v8  ;;  %248 = vmatpush.bf16.msrb.mxu1 %v422_v10 }
  0x20   :  { %499 = vmatmul.msk.bf16.vlgmr.msrb.gmra.mxu0 %vm172_vm0, %v21_v46  ;;  %500 = vmatmul.msk.bf16.vlgmr.msrb.gmra.mxu1 %vm172_vm0, %v21_v46 }
  0x21   :  { %501 = vmatmul.msk.bf16.vlgmr.msrb.gmra.mxu2 %vm172_vm0, %v21_v46 }
  0x22   :  { %502 = vmatmul.msk.bf16.vlgmr.msrb.gmra.mxu3 %vm172_vm0, %v21_v46  ;;  %v291_v46 = vsub.f32 1.0, %v290_v45 }
  0x24   :  { %v292_v47 = vmul.f32 %v533_v44, %v291_v46 }
  0x26   :  { %v293_v48 = vadd.f32 %v533_v44, %v292_v47 }
  0x28   :  { %v295_v49 = vsel %vm294_vm1, %v533_v44, %v293_v48 }
  0x86   :  { %v50_v13 = vpop.permute.xlu0 %49 }
  0x8d   :  { %v185_v11 = vpop.f32.mrf.mxu0  ;;  %v198_v12 = vpop.f32.mrf.mxu1 }
  0x8e   :  { %v186_v15 = vadd.f32 %v185_v11, %v50_v13  ;;  %v199_v16 = vadd.f32 %v198_v12, %v50_v13  ;;  %v349_v11 = vld [vmem:[%s755_s4] sm:$0xff] }
  0x8f   :  { %352 = vperm.xlu2 %531, %v349_v11  }
  0x90   :  { %v280_v21 = vadd.f32 %v199_v16, %v186_v15 }
  0x94   :  { %v211_v14 = vpop.f32.mrf.mxu2 }
  0x95   :  { %v224_v17 = vpop.f32.mrf.mxu3  ;;  %v187_v18 = vpop.f32.mrf.mxu0  ;;  %v212_v20 = vadd.f32 %v211_v14, %v50_v13 }
  0x96   :  { %v200_v19 = vpop.f32.mrf.mxu1  ;;  %v225_v23 = vadd.f32 %v224_v17, %v50_v13 }
  0x97   :  { %v281_v22 = vadd.f32 %v280_v21, %v212_v20 }
  0x99   :  { %v282_v29 = vadd.f32 %v281_v22, %v225_v23 }
  0x9c   :  { %v213_v24 = vpop.f32.mrf.mxu2 }
  0x9d   :  { %v226_v25 = vpop.f32.mrf.mxu3  ;;  %v237_v26 = vpop.f32.mrf.mxu0 }
  0x9e   :  { %v238_v27 = vadd.f32 %v237_v26, %v50_v13  ;;  %v250_v28 = vpop.f32.mrf.mxu1 }
  0x9f   :  { %v251_v31 = vadd.f32 %v250_v28, %v50_v13 }
  0xa0   :  { %v283_v30 = vadd.f32 %v282_v29, %v238_v27 }
  0xa2   :  { %v284_v33 = vadd.f32 %v283_v30, %v251_v31 }
  0xa4   :  { %v263_v32 = vpop.f32.mrf.mxu2 }
  0xa5   :  { %v264_v34 = vadd.f32 %v263_v32, %v50_v13  ;;  %v276_v35 = vpop.f32.mrf.mxu3  ;;  %v239_v36 = vpop.f32.mrf.mxu0 }
  0xa6   :  { %v252_v37 = vpop.f32.mrf.mxu1  ;;  %v277_v39 = vadd.f32 %v276_v35, %v50_v13 }
  0xa7   :  { %v285_v38 = vadd.f32 %v284_v33, %v264_v34 }
  0xa9   :  { %v286_v40 = vadd.f32 %v285_v38, %v277_v39 }
  0xab   :  { %287 = vadd.xlane.f32.xlu0 %v286_v40 }
  0xac   :  { %v265_v41 = vpop.f32.mrf.mxu2 }
  0xad   :  { %v278_v42 = vpop.f32.mrf.mxu3 }
  0xe9   :  { %v353_v25 = vpop.permute.xlu2 %352 }
 0x11e   :  { %v288_v50 = vpop.xlane.xlu0 %287 }
 0x11f   :  { %v296_v51 = vmul.f32 %v295_v49, %v288_v50 }
 0x121   :  { %v297_v52 = vsub.f32 %v186_v15, %v296_v51  ;;  %v298_v53 = vsub.f32 %v199_v16, %v296_v51  ;;  %v299_v54 = vsub.f32 %v212_v20, %v296_v51  ;;  %v300_v55 = vsub.f32 %v225_v23, %v296_v51  ;;  %v323_v20 = vld [vmem:[%s756_s3] sm:$0xff] }
 0x122   :  { %v301_v58 = vsub.f32 %v238_v27, %v296_v51  ;;  %v302_v61 = vsub.f32 %v251_v31, %v296_v51  ;;  %v303_v0 = vsub.f32 %v264_v34, %v296_v51  ;;  %v304_v3 = vsub.f32 %v277_v39, %v296_v51 }
 0x123   :  { %v305_v56 = vmul.f32 %v297_v52, %v297_v52  ;;  %v306_v57 = vmul.f32 %v298_v53, %v298_v53  ;;  %v307_v59 = vmul.f32 %v299_v54, %v299_v54  ;;  %v308_v62 = vmul.f32 %v300_v55, %v300_v55 }
 0x124   :  { %v309_v1 = vmul.f32 %v301_v58, %v301_v58  ;;  %v310_v4 = vmul.f32 %v302_v61, %v302_v61  ;;  %v311_v6 = vmul.f32 %v303_v0, %v303_v0  ;;  %v312_v8 = vmul.f32 %v304_v3, %v304_v3 }
 0x125   :  { %v313_v60 = vadd.f32 %v306_v57, %v305_v56 }
 0x127   :  { %v314_v63 = vadd.f32 %v313_v60, %v307_v59 }
 0x129   :  { %v315_v2 = vadd.f32 %v314_v63, %v308_v62 }
 0x12b   :  { %v316_v5 = vadd.f32 %v315_v2, %v309_v1 }
 0x12d   :  { %v317_v7 = vadd.f32 %v316_v5, %v310_v4 }
 0x12f   :  { %v318_v9 = vadd.f32 %v317_v7, %v311_v6 }
 0x131   :  { %v319_v10 = vadd.f32 %v318_v9, %v312_v8 }
 0x133   :  { %320 = vadd.xlane.f32.xlu1 %v319_v10 }
 0x1a6   :  { %v321_v12 = vpop.xlane.xlu1 %320 }
 0x1a7   :  { %v322_v13 = vmul.f32 %v321_v12, %v295_v49 }
 0x1a9   :  { %v324_v14 = vadd.f32 1e-05, %v322_v13 }
 0x1ab   :  { %534 = vrsqrt.f32 %v324_v14  ;;  %vm331_vm3 = vweird.f32 %v324_v14 }
 0x1b1   :  { %v535_v15 = vpop.eup %534 }
 0x1b2   :  { %v326_v16 = vmul.f32 %v535_v15, %v324_v14  ;;  %vm332_vm2 = vweird.f32 %v535_v15 }
 0x1b3   :  { %vm333_vm4 = vmor %vm331_vm3, %vm332_vm2 }
 0x1b4   :  { %v327_v17 = vmul.f32 %v535_v15, %v326_v16 }
 0x1b6   :  { %v328_v18 = vmul.f32 0.5, %v327_v17 }
 0x1b8   :  { %v329_v19 = vsub.f32 1.5, %v328_v18 }
 0x1ba   :  { %v330_v21 = vmul.f32 %v535_v15, %v329_v19 }
 0x1bc   :  { %v334_v22 = vsel %vm333_vm4, %v535_v15, %v330_v21 }
 0x1bd   :  { %v335_v23 = vmul.f32 %v334_v22, %v323_v20 }
 0x1bf   :  { %338 = vperm.xlu1 %530, %v335_v23  }
 0x231   :  { %v339_v24 = vpop.permute.xlu1 %338 }
 0x232   :  { %v341_v26 = vmul.f32 %v339_v24, %v297_v52  ;;  %v342_v27 = vmul.f32 %v339_v24, %v298_v53  ;;  %v343_v28 = vmul.f32 %v339_v24, %v299_v54  ;;  %v344_v29 = vmul.f32 %v339_v24, %v300_v55 }
 0x233   :  { %v345_v30 = vmul.f32 %v339_v24, %v301_v58  ;;  %v346_v31 = vmul.f32 %v339_v24, %v302_v61  ;;  %v347_v32 = vmul.f32 %v339_v24, %v303_v0  ;;  %v348_v33 = vmul.f32 %v339_v24, %v304_v3 }
 0x234   :  { %v355_v34 = vadd.f32 %v353_v25, %v341_v26  ;;  %v356_v35 = vadd.f32 %v353_v25, %v342_v27  ;;  %v357_v36 = vadd.f32 %v353_v25, %v343_v28  ;;  %v358_v37 = vadd.f32 %v353_v25, %v344_v29 }
 0x235   :  { %v359_v38 = vadd.f32 %v353_v25, %v345_v30  ;;  %v360_v39 = vadd.f32 %v353_v25, %v346_v31  ;;  %v361_v40 = vadd.f32 %v353_v25, %v347_v32  ;;  %v362_v41 = vadd.f32 %v353_v25, %v348_v33 }
 0x236   :  { %vm363_vm5 = vcmp.ge.f32.partialorder %v355_v34, 0.0  ;;  %vm364_vm6 = vcmp.ge.f32.partialorder %v356_v35, 0.0  ;;  %vm365_vm7 = vcmp.ge.f32.partialorder %v357_v36, 0.0  ;;  %vm366_vm8 = vcmp.ge.f32.partialorder %v358_v37, 0.0 }
 0x237   :  { %vm367_vm9 = vcmp.ge.f32.partialorder %v359_v38, 0.0  ;;  %vm368_vm10 = vcmp.ge.f32.partialorder %v360_v39, 0.0  ;;  %vm369_vm11 = vcmp.ge.f32.partialorder %v361_v40, 0.0  ;;  %vm370_vm12 = vcmp.ge.f32.partialorder %v362_v41, 0.0 }
 0x238   :  { %v371_v42 = vmul.f32 0.2, %v355_v34  ;;  %v372_v43 = vmul.f32 0.2, %v356_v35  ;;  %v373_v44 = vmul.f32 0.2, %v357_v36 }
 0x239   :  { %v374_v45 = vmul.f32 0.2, %v358_v37  ;;  %v375_v46 = vmul.f32 0.2, %v359_v38  ;;  %v376_v47 = vmul.f32 0.2, %v360_v39 }
 0x23a   :  { %v377_v48 = vmul.f32 0.2, %v361_v40  ;;  %v378_v49 = vmul.f32 0.2, %v362_v41  ;;  %v379_v50 = vsel %vm363_vm5, %v355_v34, %v371_v42  ;;  %v380_v51 = vsel %vm364_vm6, %v356_v35, %v372_v43 }
 0x23b   :  { %v381_v52 = vsel %vm365_vm7, %v357_v36, %v373_v44  ;;  %v382_v53 = vsel %vm366_vm8, %v358_v37, %v374_v45  ;;  %v383_v54 = vsel %vm367_vm9, %v359_v38, %v375_v46  ;;  %v384_v55 = vsel %vm368_vm10, %v360_v39, %v376_v47 }
 0x23c   :  { %v385_v56 = vsel %vm369_vm11, %v361_v40, %v377_v48  ;;  %v386_v57 = vsel %vm370_vm12, %v362_v41, %v378_v49  ;;  %v387_v58 = vpack.c.bf16 %v380_v51, %v379_v50  ;;  %v388_v59 = vpack.c.bf16 %v382_v53, %v381_v52 }
 0x23d   :  { %v389_v60 = vpack.c.bf16 %v384_v55, %v383_v54  ;;  %v390_v61 = vpack.c.bf16 %v386_v57, %v385_v56 }
 0x23e   :  { %391 = vst [vmem:[%s757_s5] sm:$0xff] %v387_v58 }
 0x23f   :  { %392 = vst [vmem:[%s757_s5 + $0x8] sm:$0xff] %v388_v59 }
 0x240   :  { %393 = vst [vmem:[%s757_s5 + $0x10] sm:$0xff] %v389_v60 }
 0x241   :  { %394 = vst [vmem:[%s757_s5 + $0x18] sm:$0xff] %v390_v61 }

// kernel: _lambda_.7
= control target key start
LH: loop header
LB: loop body
LE: loop exit
PB: predicated region body
PF: predicated region fallthrough
CT: control target
= control target key end

     0   :  { %s1167_s0 = inlined_call_operand.vmem [shape: bf16[384,256], index: 0, kind: input, shape index: {}]   ;;  %s1168_s1 = inlined_call_operand.vmem [shape: bf16[16,384], index: 1, kind: input, shape index: {}]   ;;  %s1169_s2 = inlined_call_operand.vmem [shape: f32[16,1], index: 2, kind: input, shape index: {}]   ;;  %s1170_s4 = inlined_call_operand.vmem [shape: f32[16,1], index: 4, kind: input, shape index: {}]   ;;  %s1171_s3 = inlined_call_operand.vmem [shape: f32[16,1], index: 3, kind: input, shape index: {}]   ;;  %s1172_s5 = inlined_call_operand.vmem [shape: bf16[16,256], index: 5, kind: output, shape index: {}]  }
   0x1   :  { %v601_v0 = vld [vmem:[%s1167_s0 + $0x70] sm:$0xf]  ;;  %v753_v1 = vld [vmem:[%s1167_s0 + $0x74] sm:$0xf0]  ;;  %v593_v9 = vld [vmem:[%s1167_s0 + $0x60] sm:$0xf] }
   0x2   :  { %v665_v2 = vld [vmem:[%s1167_s0 + $0xf0] sm:$0xf]  ;;  %v602_v3 = vor.u32 %v753_v1, %v601_v0  ;;  %v769_v4 = vld [vmem:[%s1167_s0 + $0xf4] sm:$0xf0]  ;;  %v751_v10 = vld [vmem:[%s1167_s0 + $0x64] sm:$0xf0] }
   0x3   :  { %v729_v5 = vld [vmem:[%s1167_s0 + $0x170] sm:$0xf]  ;;  %v785_v6 = vld [vmem:[%s1167_s0 + $0x174] sm:$0xf0]  ;;  %v666_v7 = vor.u32 %v769_v4, %v665_v2  ;;  %v657_v11 = vld [vmem:[%s1167_s0 + $0xe0] sm:$0xf]  ;;  %v594_v12 = vor.u32 %v751_v10, %v593_v9 }
   0x4   :  { %v730_v8 = vor.u32 %v785_v6, %v729_v5  ;;  %340 = vmatpush.bf16.msra.mxu0 %v602_v3  ;;  %v767_v13 = vld [vmem:[%s1167_s0 + $0xe4] sm:$0xf0]  ;;  %v721_v14 = vld [vmem:[%s1167_s0 + $0x160] sm:$0xf]  ;;  %v585_v18 = vld [vmem:[%s1167_s0 + $0x50] sm:$0xf] }
   0x5   :  { %v783_v15 = vld [vmem:[%s1167_s0 + $0x164] sm:$0xf0]  ;;  %354 = vmatpush.bf16.msra.mxu1 %v666_v7  ;;  %v658_v16 = vor.u32 %v767_v13, %v657_v11  ;;  %v749_v19 = vld [vmem:[%s1167_s0 + $0x54] sm:$0xf0]  ;;  %v649_v20 = vld [vmem:[%s1167_s0 + $0xd0] sm:$0xf] }
   0x6   :  { %368 = vmatpush.bf16.msra.mxu2 %v730_v8  ;;  %v722_v17 = vor.u32 %v783_v15, %v721_v14  ;;  %v765_v21 = vld [vmem:[%s1167_s0 + $0xd4] sm:$0xf0]  ;;  %v713_v22 = vld [vmem:[%s1167_s0 + $0x150] sm:$0xf]  ;;  %v586_v24 = vor.u32 %v749_v19, %v585_v18  ;;  %v752_v25 = vld [vmem:[%s1167_s0 + $0x74] sm:$0xf] }
   0x7   :  { %v781_v23 = vld [vmem:[%s1167_s0 + $0x154] sm:$0xf0]  ;;  %v603_v26 = vld [vmem:[%s1167_s0 + $0x78] sm:$0xf0]  ;;  %v650_v27 = vor.u32 %v765_v21, %v649_v20  ;;  %v577_v29 = vld [vmem:[%s1167_s0 + $0x40] sm:$0xf] }
   0x8   :  { %341 = vmatpush.bf16.msra.mxu0 %v594_v12  ;;  %v714_v28 = vor.u32 %v781_v23, %v713_v22  ;;  %v747_v30 = vld [vmem:[%s1167_s0 + $0x44] sm:$0xf0]  ;;  %v641_v31 = vld [vmem:[%s1167_s0 + $0xc0] sm:$0xf]  ;;  %v606_v32 = vor.u32 %v752_v25, %v603_v26  ;;  %v750_v36 = vld [vmem:[%s1167_s0 + $0x64] sm:$0xf] }
   0x9   :  { %355 = vmatpush.bf16.msra.mxu1 %v658_v16  ;;  %v763_v33 = vld [vmem:[%s1167_s0 + $0xc4] sm:$0xf0]  ;;  %v705_v34 = vld [vmem:[%s1167_s0 + $0x140] sm:$0xf]  ;;  %v595_v37 = vld [vmem:[%s1167_s0 + $0x68] sm:$0xf0]  ;;  %v578_v38 = vor.u32 %v747_v30, %v577_v29 }
   0xa   :  { %369 = vmatpush.bf16.msra.mxu2 %v722_v17  ;;  %v779_v35 = vld [vmem:[%s1167_s0 + $0x144] sm:$0xf0]  ;;  %382 = vmatpush.bf16.msra.mxu3 %v606_v32  ;;  %v569_v39 = vld [vmem:[%s1167_s0 + $0x30] sm:$0xf]  ;;  %v745_v40 = vld [vmem:[%s1167_s0 + $0x34] sm:$0xf0]  ;;  %v598_v41 = vor.u32 %v750_v36, %v595_v37  ;;  %v642_v42 = vor.u32 %v763_v33, %v641_v31 }
   0xb   :  { %v706_v43 = vor.u32 %v779_v35, %v705_v34  ;;  %v633_v44 = vld [vmem:[%s1167_s0 + $0xb0] sm:$0xf]  ;;  %v761_v45 = vld [vmem:[%s1167_s0 + $0xb4] sm:$0xf0]  ;;  %v748_v46 = vld [vmem:[%s1167_s0 + $0x54] sm:$0xf]  ;;  %v570_v51 = vor.u32 %v745_v40, %v569_v39 }
   0xc   :  { %342 = vmatpush.bf16.msra.mxu0 %v586_v24  ;;  %v697_v47 = vld [vmem:[%s1167_s0 + $0x130] sm:$0xf]  ;;  %v777_v48 = vld [vmem:[%s1167_s0 + $0x134] sm:$0xf0]  ;;  %v587_v49 = vld [vmem:[%s1167_s0 + $0x58] sm:$0xf0]  ;;  %v634_v54 = vor.u32 %v761_v45, %v633_v44 }
   0xd   :  { %356 = vmatpush.bf16.msra.mxu1 %v650_v27  ;;  %v590_v50 = vor.u32 %v748_v46, %v587_v49  ;;  %v746_v52 = vld [vmem:[%s1167_s0 + $0x44] sm:$0xf]  ;;  %v579_v53 = vld [vmem:[%s1167_s0 + $0x48] sm:$0xf0]  ;;  %v698_v55 = vor.u32 %v777_v48, %v697_v47  ;;  %v561_v56 = vld [vmem:[%s1167_s0 + $0x20] sm:$0xf] }
   0xe   :  { %370 = vmatpush.bf16.msra.mxu2 %v714_v28  ;;  %383 = vmatpush.bf16.msra.mxu3 %v598_v41  ;;  %v743_v57 = vld [vmem:[%s1167_s0 + $0x24] sm:$0xf0]  ;;  %v625_v58 = vld [vmem:[%s1167_s0 + $0xa0] sm:$0xf]  ;;  %v582_v62 = vor.u32 %v746_v52, %v579_v53  ;;  %v744_v0 = vld [vmem:[%s1167_s0 + $0x34] sm:$0xf] }
   0xf   :  { %v759_v59 = vld [vmem:[%s1167_s0 + $0xa4] sm:$0xf0]  ;;  %v689_v60 = vld [vmem:[%s1167_s0 + $0x120] sm:$0xf]  ;;  %v562_v63 = vor.u32 %v743_v57, %v561_v56  ;;  %v571_v1 = vld [vmem:[%s1167_s0 + $0x38] sm:$0xf0] }
  0x10   :  { %343 = vmatpush.bf16.msra.mxu0 %v578_v38  ;;  %v775_v61 = vld [vmem:[%s1167_s0 + $0x124] sm:$0xf0]  ;;  %v626_v2 = vor.u32 %v759_v59, %v625_v58  ;;  %v553_v4 = vld [vmem:[%s1167_s0 + $0x10] sm:$0xf]  ;;  %v741_v5 = vld [vmem:[%s1167_s0 + $0x14] sm:$0xf0]  ;;  %v574_v11 = vor.u32 %v744_v0, %v571_v1 }
  0x11   :  { %357 = vmatpush.bf16.msra.mxu1 %v642_v42  ;;  %v690_v3 = vor.u32 %v775_v61, %v689_v60  ;;  %v617_v6 = vld [vmem:[%s1167_s0 + $0x90] sm:$0xf]  ;;  %v757_v7 = vld [vmem:[%s1167_s0 + $0x94] sm:$0xf0]  ;;  %v545_v10 = vld [vmem:[%s1167_s0] sm:$0xf]  ;;  %v554_v12 = vor.u32 %v741_v5, %v553_v4 }
  0x12   :  { %371 = vmatpush.bf16.msra.mxu2 %v706_v43  ;;  %384 = vmatpush.bf16.msra.mxu3 %v590_v50  ;;  %v681_v8 = vld [vmem:[%s1167_s0 + $0x110] sm:$0xf]  ;;  %v773_v9 = vld [vmem:[%s1167_s0 + $0x114] sm:$0xf0]  ;;  %v739_v13 = vld [vmem:[%s1167_s0 + $0x4] sm:$0xf0]  ;;  %v618_v16 = vor.u32 %v757_v7, %v617_v6 }
  0x13   :  { %v742_v14 = vld [vmem:[%s1167_s0 + $0x24] sm:$0xf]  ;;  %v563_v15 = vld [vmem:[%s1167_s0 + $0x28] sm:$0xf0]  ;;  %v682_v17 = vor.u32 %v773_v9, %v681_v8  ;;  %v609_v18 = vld [vmem:[%s1167_s0 + $0x80] sm:$0xf]  ;;  %v546_v28 = vor.u32 %v739_v13, %v545_v10 }
  0x14   :  { %344 = vmatpush.bf16.msra.mxu0 %v570_v51  ;;  %v755_v19 = vld [vmem:[%s1167_s0 + $0x84] sm:$0xf0]  ;;  %v768_v20 = vld [vmem:[%s1167_s0 + $0xf4] sm:$0xf]  ;;  %v667_v21 = vld [vmem:[%s1167_s0 + $0xf8] sm:$0xf0]  ;;  %v566_v26 = vor.u32 %v742_v14, %v563_v15 }
  0x15   :  { %358 = vmatpush.bf16.msra.mxu1 %v634_v54  ;;  %v784_v22 = vld [vmem:[%s1167_s0 + $0x174] sm:$0xf]  ;;  %v731_v23 = vld [vmem:[%s1167_s0 + $0x178] sm:$0xf0]  ;;  %v673_v24 = vld [vmem:[%s1167_s0 + $0x100] sm:$0xf]  ;;  %v610_v32 = vor.u32 %v755_v19, %v609_v18  ;;  %v670_v33 = vor.u32 %v768_v20, %v667_v21 }
  0x16   :  { %372 = vmatpush.bf16.msra.mxu2 %v698_v55  ;;  %385 = vmatpush.bf16.msra.mxu3 %v582_v62  ;;  %v771_v25 = vld [vmem:[%s1167_s0 + $0x104] sm:$0xf0]  ;;  %v533_v27 = vld [vmem:[%s1168_s1] sm:$0xf]  ;;  %v736_v29 = vld [vmem:[%s1168_s1 + $0x8] sm:$0xf0]  ;;  %v734_v37 = vor.u32 %v784_v22, %v731_v23 }
  0x17   :  { %v740_v30 = vld [vmem:[%s1167_s0 + $0x14] sm:$0xf]  ;;  %v555_v31 = vld [vmem:[%s1167_s0 + $0x18] sm:$0xf0]  ;;  %v766_v34 = vld [vmem:[%s1167_s0 + $0xe4] sm:$0xf]  ;;  %v674_v38 = vor.u32 %v771_v25, %v673_v24  ;;  %v534_v44 = vor.u32 %v736_v29, %v533_v27 }
  0x18   :  { %345 = vmatpush.bf16.msra.mxu0 %v562_v63  ;;  %v735_v35 = vld [vmem:[%s1168_s1 + $0x4] sm:$0xf]  ;;  %v535_v36 = vld [vmem:[%s1168_s1 + $0xc] sm:$0xf0]  ;;  %v659_v39 = vld [vmem:[%s1167_s0 + $0xe8] sm:$0xf0]  ;;  %v558_v45 = vor.u32 %v740_v30, %v555_v31 }
  0x19   :  { %359 = vmatpush.bf16.msra.mxu1 %v626_v2  ;;  %v541_v40 = vld [vmem:[%s1168_s1 + $0x8] sm:$0xf]  ;;  %v737_v41 = vld [vmem:[%s1168_s1 + $0x10] sm:$0xf0]  ;;  %v782_v42 = vld [vmem:[%s1167_s0 + $0x164] sm:$0xf]  ;;  %v1057_v46 = vor.u32 %v735_v35, %v535_v36  ;;  %v662_v50 = vor.u32 %v766_v34, %v659_v39 }
  0x1a   :  { %373 = vmatpush.bf16.msra.mxu2 %v690_v3  ;;  %386 = vmatpush.bf16.msra.mxu3 %v574_v11  ;;  %v723_v43 = vld [vmem:[%s1167_s0 + $0x168] sm:$0xf0]  ;;  %v738_v47 = vld [vmem:[%s1167_s0 + $0x4] sm:$0xf]  ;;  %v797_v49 = vmov 0   ;;  %v1065_v51 = vor.u32 %v737_v41, %v541_v40 }
  0x1b   :  { %v547_v48 = vld [vmem:[%s1167_s0 + $0x8] sm:$0xf0]  ;;  %788 = vset.pattern.permute.xlu0 %v797_v49  ;;  %v72_v52 = vld [vmem:[%s1169_s2] sm:$0xff]  ;;  %v726_v53 = vor.u32 %v782_v42, %v723_v43  ;;  %v764_v54 = vld [vmem:[%s1167_s0 + $0xd4] sm:$0xf]  ;;  %789 = vset.pattern.permute.xlu1 %v797_v49 }
  0x1c   :  { %346 = vmatpush.bf16.msra.mxu0 %v554_v12  ;;  %v651_v55 = vld [vmem:[%s1167_s0 + $0xd8] sm:$0xf0]  ;;  %v780_v56 = vld [vmem:[%s1167_s0 + $0x154] sm:$0xf]  ;;  %v550_v58 = vor.u32 %v738_v47, %v547_v48  ;;  %76 = vperm.xlu0 %788, %v72_v52   ;;  %v762_v61 = vld [vmem:[%s1167_s0 + $0xc4] sm:$0xf] }
  0x1d   :  { %360 = vmatpush.bf16.msra.mxu1 %v618_v16  ;;  %v715_v57 = vld [vmem:[%s1167_s0 + $0x158] sm:$0xf0]  ;;  %v654_v59 = vor.u32 %v764_v54, %v651_v55  ;;  %v643_v62 = vld [vmem:[%s1167_s0 + $0xc8] sm:$0xf0]  ;;  %v778_v63 = vld [vmem:[%s1167_s0 + $0x144] sm:$0xf]  ;;  %790 = vset.pattern.permute.xlu2 %v797_v49 }
  0x1e   :  { %374 = vmatpush.bf16.msra.mxu2 %v682_v17  ;;  %387 = vmatpush.bf16.msra.mxu3 %v566_v26  ;;  %v718_v60 = vor.u32 %v780_v56, %v715_v57  ;;  %v707_v0 = vld [vmem:[%s1167_s0 + $0x148] sm:$0xf0]  ;;  %v646_v1 = vor.u32 %v762_v61, %v643_v62  ;;  %v760_v4 = vld [vmem:[%s1167_s0 + $0xb4] sm:$0xf]  ;;  %v635_v5 = vld [vmem:[%s1167_s0 + $0xb8] sm:$0xf0] }
  0x1f   :  { %v73_v2 = vld [vmem:[%s1169_s2 + $0x8] sm:$0xff]  ;;  %v710_v3 = vor.u32 %v778_v63, %v707_v0  ;;  %v776_v6 = vld [vmem:[%s1167_s0 + $0x134] sm:$0xf]  ;;  %v699_v7 = vld [vmem:[%s1167_s0 + $0x138] sm:$0xf0]  ;;  %v638_v8 = vor.u32 %v760_v4, %v635_v5  ;;  %v798_v56 = vmov 256.0  }
  0x20   :  { %347 = vmatpush.bf16.msra.mxu0 %v546_v28  ;;  %v702_v9 = vor.u32 %v776_v6, %v699_v7  ;;  %v758_v10 = vld [vmem:[%s1167_s0 + $0xa4] sm:$0xf]  ;;  %v627_v11 = vld [vmem:[%s1167_s0 + $0xa8] sm:$0xf0]  ;;  %v756_v16 = vld [vmem:[%s1167_s0 + $0x94] sm:$0xf]  ;;  %791 = vrcp.f32 %v798_v56 }
  0x21   :  { %361 = vmatpush.bf16.msra.mxu1 %v610_v32  ;;  %v774_v12 = vld [vmem:[%s1167_s0 + $0x124] sm:$0xf]  ;;  %v691_v13 = vld [vmem:[%s1167_s0 + $0x128] sm:$0xf0]  ;;  %v630_v14 = vor.u32 %v758_v10, %v627_v11  ;;  %v619_v17 = vld [vmem:[%s1167_s0 + $0x98] sm:$0xf0] }
  0x22   :  { %375 = vmatpush.bf16.msra.mxu2 %v674_v38  ;;  %388 = vmatpush.bf16.msra.mxu3 %v558_v45  ;;  %v694_v15 = vor.u32 %v774_v12, %v691_v13  ;;  %v772_v18 = vld [vmem:[%s1167_s0 + $0x114] sm:$0xf]  ;;  %v683_v19 = vld [vmem:[%s1167_s0 + $0x118] sm:$0xf0]  ;;  %v622_v20 = vor.u32 %v756_v16, %v619_v17  ;;  %v754_v22 = vld [vmem:[%s1167_s0 + $0x84] sm:$0xf] }
  0x23   :  { %348 = vmatmul.bf16.vlgmr.msra.gmra.mxu0 %v534_v44  ;;  %v686_v21 = vor.u32 %v772_v18, %v683_v19  ;;  %v611_v23 = vld [vmem:[%s1167_s0 + $0x88] sm:$0xf0]  ;;  %v770_v24 = vld [vmem:[%s1167_s0 + $0x104] sm:$0xf] }
  0x24   :  { %396 = vmatpush.bf16.msrb.mxu0 %v670_v33  ;;  %362 = vmatmul.bf16.vlgmr.msra.gmra.mxu1 %v1057_v46  ;;  %v675_v25 = vld [vmem:[%s1167_s0 + $0x108] sm:$0xf0]  ;;  %v614_v26 = vor.u32 %v754_v22, %v611_v23 }
  0x25   :  { %410 = vmatpush.bf16.msrb.mxu1 %v734_v37  ;;  %376 = vmatmul.bf16.vlgmr.msra.gmra.mxu2 %v1065_v51  ;;  %v678_v27 = vor.u32 %v770_v24, %v675_v25 }
  0x26   :  { %389 = vmatpush.bf16.msra.mxu3 %v550_v58  ;;  %81 = vperm.xlu0 %788, %v73_v2   ;;  %v792_v57 = vpop.eup %791 }
  0x27   :  { %v431_v58 = vmul.f32 256.0, %v792_v57  ;;  %vm435_vm0 = vweird.f32 %v792_v57 }
  0x28   :  { %397 = vmatpush.bf16.msrb.mxu0 %v662_v50 }
  0x29   :  { %411 = vmatpush.bf16.msrb.mxu1 %v726_v53  ;;  %390 = vmatmul.bf16.vlgmr.msra.gmra.mxu3 %v534_v44 }
  0x2c   :  { %398 = vmatpush.bf16.msrb.mxu0 %v654_v59  ;;  %v432_v59 = vsub.f32 1.0, %v431_v58 }
  0x2d   :  { %412 = vmatpush.bf16.msrb.mxu1 %v718_v60 }
  0x2e   :  { %v433_v60 = vmul.f32 %v792_v57, %v432_v59 }
  0x30   :  { %399 = vmatpush.bf16.msrb.mxu0 %v646_v1  ;;  %v434_v61 = vadd.f32 %v792_v57, %v433_v60 }
  0x31   :  { %413 = vmatpush.bf16.msrb.mxu1 %v710_v3 }
  0x32   :  { %v436_v62 = vsel %vm435_vm0, %v792_v57, %v434_v61 }
  0x34   :  { %400 = vmatpush.bf16.msrb.mxu0 %v638_v8 }
  0x35   :  { %414 = vmatpush.bf16.msrb.mxu1 %v702_v9 }
  0x38   :  { %401 = vmatpush.bf16.msrb.mxu0 %v630_v14 }
  0x39   :  { %415 = vmatpush.bf16.msrb.mxu1 %v694_v15  ;;  %v495_v15 = vld [vmem:[%s1170_s4] sm:$0xff] }
  0x3c   :  { %402 = vmatpush.bf16.msrb.mxu0 %v622_v20 }
  0x3d   :  { %416 = vmatpush.bf16.msrb.mxu1 %v686_v21 }
  0x40   :  { %403 = vmatpush.bf16.msrb.mxu0 %v614_v26 }
  0x41   :  { %417 = vmatpush.bf16.msrb.mxu1 %v678_v27  ;;  %v455_v27 = vld [vmem:[%s1171_s3] sm:$0xff] }
  0x43   :  { %404 = vmatmul.bf16.vlgmr.msrb.gmra.mxu0 %v1057_v46 }
  0x44   :  { %418 = vmatmul.bf16.vlgmr.msrb.gmra.mxu1 %v1065_v51 }
  0x8e   :  { %v77_v30 = vpop.permute.xlu0 %76 }
  0x98   :  { %v82_v38 = vpop.permute.xlu0 %81 }
  0xa0   :  { %v349_v28 = vpop.f32.mrf.mxu0 }
  0xa1   :  { %v363_v29 = vpop.f32.mrf.mxu1  ;;  %v350_v34 = vadd.f32 %v349_v28, %v77_v30 }
  0xa3   :  { %v364_v37 = vadd.f32 %v363_v29, %v350_v34  ;;  %v456_v34 = vld [vmem:[%s1171_s3 + $0x8] sm:$0xff] }
  0xa8   :  { %v351_v31 = vpop.f32.mrf.mxu0  ;;  %v377_v36 = vpop.f32.mrf.mxu2 }
  0xa9   :  { %v365_v32 = vpop.f32.mrf.mxu1  ;;  %v378_v42 = vadd.f32 %v377_v36, %v364_v37  ;;  %v352_v43 = vadd.f32 %v351_v31, %v82_v38  ;;  %v496_v36 = vld [vmem:[%s1170_s4 + $0x8] sm:$0xff] }
  0xab   :  { %v366_v47 = vadd.f32 %v365_v32, %v352_v43 }
  0xac   :  { %v391_v33 = vpop.f32.mrf.mxu3 }
  0xad   :  { %v392_v35 = vadd.f32 %v391_v33, %v77_v30 }
  0xb0   :  { %v379_v49 = vpop.f32.mrf.mxu2 }
  0xb1   :  { %v380_v53 = vadd.f32 %v379_v49, %v366_v47 }
  0xb4   :  { %v393_v45 = vpop.f32.mrf.mxu3 }
  0xb5   :  { %v394_v48 = vadd.f32 %v393_v45, %v82_v38 }
  0xc0   :  { %v405_v39 = vpop.f32.mrf.mxu0 }
  0xc1   :  { %v406_v40 = vadd.f32 %v405_v39, %v392_v35  ;;  %v419_v41 = vpop.f32.mrf.mxu1 }
  0xc3   :  { %v420_v44 = vadd.f32 %v419_v41, %v406_v40 }
  0xc5   :  { %v424_v46 = vadd.f32 %v420_v44, %v378_v42 }
  0xc7   :  { %425 = vadd.xlane.f32.xlu1 %v424_v46 }
  0xc8   :  { %v407_v50 = vpop.f32.mrf.mxu0 }
  0xc9   :  { %v408_v51 = vadd.f32 %v407_v50, %v394_v48  ;;  %v421_v52 = vpop.f32.mrf.mxu1 }
  0xcb   :  { %v422_v54 = vadd.f32 %v421_v52, %v408_v51 }
  0xcd   :  { %v427_v55 = vadd.f32 %v422_v54, %v380_v53 }
  0xcf   :  { %428 = vadd.xlane.f32.xlu1 %v427_v55 }
 0x13a   :  { %v426_v63 = vpop.xlane.xlu1 %425 }
 0x13b   :  { %v437_v0 = vmul.f32 %v436_v62, %v426_v63 }
 0x13d   :  { %v439_v1 = vsub.f32 %v378_v42, %v437_v0  ;;  %v440_v2 = vsub.f32 %v420_v44, %v437_v0 }
 0x13f   :  { %v443_v3 = vmul.f32 %v439_v1, %v439_v1  ;;  %v444_v4 = vmul.f32 %v440_v2, %v440_v2 }
 0x141   :  { %v447_v5 = vadd.f32 %v444_v4, %v443_v3 }
 0x142   :  { %v429_v6 = vpop.xlane.xlu1 %428 }
 0x143   :  { %v438_v7 = vmul.f32 %v436_v62, %v429_v6  ;;  %448 = vadd.xlane.f32.xlu2 %v447_v5 }
 0x145   :  { %v441_v8 = vsub.f32 %v380_v53, %v438_v7  ;;  %v442_v9 = vsub.f32 %v422_v54, %v438_v7 }
 0x147   :  { %v445_v10 = vmul.f32 %v441_v8, %v441_v8  ;;  %v446_v11 = vmul.f32 %v442_v9, %v442_v9 }
 0x149   :  { %v450_v12 = vadd.f32 %v446_v11, %v445_v10 }
 0x14b   :  { %451 = vadd.xlane.f32.xlu2 %v450_v12 }
 0x163   :  { %499 = vperm.xlu2 %790, %v495_v15  }
 0x1b6   :  { %v449_v13 = vpop.xlane.xlu2 %448 }
 0x1b7   :  { %v453_v14 = vmul.f32 %v449_v13, %v436_v62 }
 0x1b9   :  { %v457_v16 = vadd.f32 1e-05, %v453_v14 }
 0x1bb   :  { %793 = vrsqrt.f32 %v457_v16  ;;  %vm465_vm2 = vweird.f32 %v457_v16 }
 0x1be   :  { %v452_v17 = vpop.xlane.xlu2 %451 }
 0x1bf   :  { %v454_v18 = vmul.f32 %v452_v17, %v436_v62 }
 0x1c1   :  { %v794_v19 = vpop.eup %793  ;;  %v458_v20 = vadd.f32 1e-05, %v454_v18 }
 0x1c2   :  { %v460_v21 = vmul.f32 %v794_v19, %v457_v16  ;;  %vm466_vm1 = vweird.f32 %v794_v19 }
 0x1c3   :  { %795 = vrsqrt.f32 %v458_v20  ;;  %vm467_vm3 = vmor %vm465_vm2, %vm466_vm1  ;;  %vm475_vm5 = vweird.f32 %v458_v20 }
 0x1c4   :  { %v461_v22 = vmul.f32 %v794_v19, %v460_v21 }
 0x1c6   :  { %v462_v23 = vmul.f32 0.5, %v461_v22  ;;  %v500_v40 = vpop.permute.xlu2 %499 }
 0x1c8   :  { %v463_v24 = vsub.f32 1.5, %v462_v23 }
 0x1c9   :  { %v796_v25 = vpop.eup %795 }
 0x1ca   :  { %v470_v26 = vmul.f32 %v796_v25, %v458_v20  ;;  %v464_v28 = vmul.f32 %v794_v19, %v463_v24  ;;  %vm476_vm4 = vweird.f32 %v796_v25 }
 0x1cb   :  { %vm477_vm6 = vmor %vm475_vm5, %vm476_vm4 }
 0x1cc   :  { %v471_v29 = vmul.f32 %v796_v25, %v470_v26  ;;  %v468_v30 = vsel %vm467_vm3, %v794_v19, %v464_v28 }
 0x1cd   :  { %v479_v31 = vmul.f32 %v468_v30, %v455_v27 }
 0x1ce   :  { %v472_v32 = vmul.f32 0.5, %v471_v29 }
 0x1cf   :  { %483 = vperm.xlu0 %788, %v479_v31  }
 0x1d0   :  { %v473_v33 = vsub.f32 1.5, %v472_v32 }
 0x1d2   :  { %v474_v35 = vmul.f32 %v796_v25, %v473_v33 }
 0x1d4   :  { %v478_v37 = vsel %vm477_vm6, %v796_v25, %v474_v35 }
 0x1d5   :  { %v480_v38 = vmul.f32 %v478_v37, %v456_v34 }
 0x1d7   :  { %504 = vperm.xlu0 %788, %v496_v36   ;;  %488 = vperm.xlu1 %789, %v480_v38  }
 0x241   :  { %v484_v39 = vpop.permute.xlu0 %483 }
 0x242   :  { %v491_v41 = vmul.f32 %v484_v39, %v439_v1  ;;  %v492_v42 = vmul.f32 %v484_v39, %v440_v2 }
 0x244   :  { %v507_v43 = vadd.f32 %v500_v40, %v491_v41  ;;  %v508_v44 = vadd.f32 %v500_v40, %v492_v42 }
 0x246   :  { %vm511_vm7 = vcmp.ge.f32.partialorder %v507_v43, 0.0  ;;  %vm512_vm8 = vcmp.ge.f32.partialorder %v508_v44, 0.0  ;;  %v515_v45 = vmul.f32 0.2, %v507_v43  ;;  %v516_v46 = vmul.f32 0.2, %v508_v44 }
 0x248   :  { %v519_v47 = vsel %vm511_vm7, %v507_v43, %v515_v45  ;;  %v520_v48 = vsel %vm512_vm8, %v508_v44, %v516_v46 }
 0x249   :  { %v523_v49 = vpack.c.bf16 %v520_v48, %v519_v47  ;;  %v489_v50 = vpop.permute.xlu1 %488  ;;  %v505_v53 = vpop.permute.xlu0 %504 }
 0x24a   :  { %v493_v51 = vmul.f32 %v489_v50, %v441_v8  ;;  %v494_v52 = vmul.f32 %v489_v50, %v442_v9 }
 0x24b   :  { %525 = vst [vmem:[%s1172_s5] sm:$0xff] %v523_v49 }
 0x24c   :  { %v509_v54 = vadd.f32 %v505_v53, %v493_v51  ;;  %v510_v55 = vadd.f32 %v505_v53, %v494_v52 }
 0x24e   :  { %vm513_vm9 = vcmp.ge.f32.partialorder %v509_v54, 0.0  ;;  %vm514_vm10 = vcmp.ge.f32.partialorder %v510_v55, 0.0  ;;  %v517_v56 = vmul.f32 0.2, %v509_v54  ;;  %v518_v57 = vmul.f32 0.2, %v510_v55 }
 0x250   :  { %v521_v58 = vsel %vm513_vm9, %v509_v54, %v517_v56  ;;  %v522_v59 = vsel %vm514_vm10, %v510_v55, %v518_v57 }
 0x251   :  { %v524_v60 = vpack.c.bf16 %v522_v59, %v521_v58 }
 0x253   :  { %526 = vst [vmem:[%s1172_s5 + $0x8] sm:$0xff] %v524_v60 }

// kernel: _lambda_.8
= control target key start
LH: loop header
LB: loop body
LE: loop exit
PB: predicated region body
PF: predicated region fallthrough
CT: control target
= control target key end

     0   :  { %v1122_v21 = vmov 0   ;;  %vm614_vm0 = vcmask 261120   ;;  %vm782_vm15 = vcmask 257024   ;;  %s1450_s0 = inlined_call_operand.vmem [shape: bf16[768,32], index: 0, kind: input, shape index: {}]   ;;  %s1451_s2 = inlined_call_operand.vmem [shape: f32[32,1], index: 2, kind: input, shape index: {}]   ;;  %s1452_s1 = inlined_call_operand.vmem [shape: bf16[32,768], index: 1, kind: input, shape index: {}]   ;;  %s1453_s4 = inlined_call_operand.vmem [shape: f32[32,1], index: 4, kind: input, shape index: {}]   ;;  %s1454_s3 = inlined_call_operand.vmem [shape: f32[32,1], index: 3, kind: input, shape index: {}]   ;;  %s1455_s5 = inlined_call_operand.vmem [shape: bf16[32,32], index: 5, kind: output, shape index: {}]  }
   0x1   :  { %v1050_v0 = vld [vmem:[%s1450_s0 + $0x38] sm:$0xff]  ;;  %v1049_v4 = vld [vmem:[%s1450_s0 + $0x30] sm:$0xff]  ;;  %v1048_v8 = vld [vmem:[%s1450_s0 + $0x28] sm:$0xff]  ;;  %1109 = vset.pattern.permute.xlu0 %v1122_v21  ;;  %1110 = vset.pattern.permute.xlu1 %v1122_v21 }
   0x2   :  { %v1058_v1 = vld [vmem:[%s1450_s0 + $0x78] sm:$0xff]  ;;  %500 = vmatpush.bf16.msra.mxu0 %v1050_v0  ;;  %v1057_v5 = vld [vmem:[%s1450_s0 + $0x70] sm:$0xff]  ;;  %v1056_v9 = vld [vmem:[%s1450_s0 + $0x68] sm:$0xff]  ;;  %1111 = vset.pattern.permute.xlu2 %v1122_v21 }
   0x3   :  { %v1066_v2 = vld [vmem:[%s1450_s0 + $0xb8] sm:$0xff]  ;;  %519 = vmatpush.bf16.msra.mxu1 %v1058_v1  ;;  %v1065_v6 = vld [vmem:[%s1450_s0 + $0xb0] sm:$0xff]  ;;  %v1064_v10 = vld [vmem:[%s1450_s0 + $0xa8] sm:$0xff] }
   0x4   :  { %v1074_v3 = vld [vmem:[%s1450_s0 + $0xf8] sm:$0xff]  ;;  %538 = vmatpush.bf16.msra.mxu2 %v1066_v2  ;;  %v1073_v7 = vld [vmem:[%s1450_s0 + $0xf0] sm:$0xff]  ;;  %v1072_v11 = vld [vmem:[%s1450_s0 + $0xe8] sm:$0xff] }
   0x5   :  { %557 = vmatpush.bf16.msra.mxu3 %v1074_v3  ;;  %v1047_v12 = vld [vmem:[%s1450_s0 + $0x20] sm:$0xff]  ;;  %v1046_v16 = vld [vmem:[%s1450_s0 + $0x18] sm:$0xff]  ;;  %v1045_v22 = vld [vmem:[%s1450_s0 + $0x10] sm:$0xff] }
   0x6   :  { %501 = vmatpush.bf16.msra.mxu0 %v1049_v4  ;;  %v1055_v13 = vld [vmem:[%s1450_s0 + $0x60] sm:$0xff]  ;;  %v1054_v17 = vld [vmem:[%s1450_s0 + $0x58] sm:$0xff]  ;;  %v1053_v23 = vld [vmem:[%s1450_s0 + $0x50] sm:$0xff] }
   0x7   :  { %520 = vmatpush.bf16.msra.mxu1 %v1057_v5  ;;  %v1063_v14 = vld [vmem:[%s1450_s0 + $0xa0] sm:$0xff]  ;;  %v1062_v18 = vld [vmem:[%s1450_s0 + $0x98] sm:$0xff]  ;;  %v1061_v24 = vld [vmem:[%s1450_s0 + $0x90] sm:$0xff] }
   0x8   :  { %539 = vmatpush.bf16.msra.mxu2 %v1065_v6  ;;  %v1071_v15 = vld [vmem:[%s1450_s0 + $0xe0] sm:$0xff]  ;;  %v1070_v19 = vld [vmem:[%s1450_s0 + $0xd8] sm:$0xff]  ;;  %v1069_v25 = vld [vmem:[%s1450_s0 + $0xd0] sm:$0xff] }
   0x9   :  { %558 = vmatpush.bf16.msra.mxu3 %v1073_v7  ;;  %v128_v20 = vld [vmem:[%s1451_s2] sm:$0xff]  ;;  %v1044_v26 = vld [vmem:[%s1450_s0 + $0x8] sm:$0xff]  ;;  %v1034_v36 = vld [vmem:[%s1452_s1 + $0x14] sm:$0xf0] }
   0xa   :  { %502 = vmatpush.bf16.msra.mxu0 %v1048_v8  ;;  %134 = vperm.xlu0 %1109, %v128_v20   ;;  %v1052_v27 = vld [vmem:[%s1450_s0 + $0x48] sm:$0xff]  ;;  %v1043_v31 = vld [vmem:[%s1450_s0] sm:$0xff]  ;;  %v795_v38 = vld [vmem:[%s1452_s1 + $0x18] sm:$0xf0] }
   0xb   :  { %521 = vmatpush.bf16.msra.mxu1 %v1056_v9  ;;  %v129_v28 = vld [vmem:[%s1451_s2 + $0x8] sm:$0xff]  ;;  %v1051_v32 = vld [vmem:[%s1450_s0 + $0x40] sm:$0xff]  ;;  %v130_v43 = vld [vmem:[%s1451_s2 + $0x10] sm:$0xff] }
   0xc   :  { %540 = vmatpush.bf16.msra.mxu2 %v1064_v10  ;;  %v1060_v29 = vld [vmem:[%s1450_s0 + $0x88] sm:$0xff]  ;;  %v1059_v33 = vld [vmem:[%s1450_s0 + $0x80] sm:$0xff]  ;;  %v1082_v44 = vld [vmem:[%s1450_s0 + $0x138] sm:$0xff]  ;;  %144 = vperm.xlu1 %1110, %v130_v43  }
   0xd   :  { %559 = vmatpush.bf16.msra.mxu3 %v1072_v11  ;;  %v1068_v30 = vld [vmem:[%s1450_s0 + $0xc8] sm:$0xff]  ;;  %v1067_v34 = vld [vmem:[%s1450_s0 + $0xc0] sm:$0xff]  ;;  %v1090_v49 = vld [vmem:[%s1450_s0 + $0x178] sm:$0xff] }
   0xe   :  { %503 = vmatpush.bf16.msra.mxu0 %v1047_v12  ;;  %v793_v35 = vld [vmem:[%s1452_s1] sm:$0xf]  ;;  %v1031_v37 = vld [vmem:[%s1452_s1 + $0x4] sm:$0xf]  ;;  %v801_v39 = vld [vmem:[%s1452_s1 + $0x8] sm:$0xf] }
   0xf   :  { %522 = vmatpush.bf16.msra.mxu1 %v1055_v13  ;;  %v1035_v40 = vld [vmem:[%s1452_s1 + $0x1c] sm:$0xf0]  ;;  %v1032_v41 = vld [vmem:[%s1452_s1 + $0xc] sm:$0xf]  ;;  %v803_v42 = vld [vmem:[%s1452_s1 + $0x20] sm:$0xf0]  ;;  %v794_v45 = vor.u32 %v1034_v36, %v793_v35  ;;  %v798_v46 = vor.u32 %v1031_v37, %v795_v38 }
  0x10   :  { %541 = vmatpush.bf16.msra.mxu2 %v1063_v14  ;;  %v802_v47 = vor.u32 %v1035_v40, %v801_v39  ;;  %v806_v48 = vor.u32 %v1032_v41, %v803_v42  ;;  %v1081_v50 = vld [vmem:[%s1450_s0 + $0x130] sm:$0xff]  ;;  %v131_v52 = vld [vmem:[%s1451_s2 + $0x18] sm:$0xff]  ;;  %v1080_v53 = vld [vmem:[%s1450_s0 + $0x128] sm:$0xff] }
  0x11   :  { %560 = vmatpush.bf16.msra.mxu3 %v1071_v15  ;;  %v1089_v51 = vld [vmem:[%s1450_s0 + $0x170] sm:$0xff]  ;;  %v1088_v54 = vld [vmem:[%s1450_s0 + $0x168] sm:$0xff]  ;;  %v1079_v55 = vld [vmem:[%s1450_s0 + $0x120] sm:$0xff] }
  0x12   :  { %504 = vmatpush.bf16.msra.mxu0 %v1046_v16  ;;  %139 = vperm.xlu0 %1109, %v129_v28   ;;  %v1087_v56 = vld [vmem:[%s1450_s0 + $0x160] sm:$0xff]  ;;  %v817_v57 = vld [vmem:[%s1452_s1 + $0x30] sm:$0xf]  ;;  %v1040_v58 = vld [vmem:[%s1452_s1 + $0x44] sm:$0xf0] }
  0x13   :  { %523 = vmatpush.bf16.msra.mxu1 %v1054_v17  ;;  %v1037_v59 = vld [vmem:[%s1452_s1 + $0x34] sm:$0xf]  ;;  %v819_v60 = vld [vmem:[%s1452_s1 + $0x48] sm:$0xf0]  ;;  %v825_v61 = vld [vmem:[%s1452_s1 + $0x38] sm:$0xf]  ;;  %v818_v2 = vor.u32 %v1040_v58, %v817_v57 }
  0x14   :  { %542 = vmatpush.bf16.msra.mxu2 %v1062_v18  ;;  %149 = vperm.xlu1 %1110, %v131_v52   ;;  %v1041_v62 = vld [vmem:[%s1452_s1 + $0x4c] sm:$0xf0]  ;;  %v1038_v63 = vld [vmem:[%s1452_s1 + $0x3c] sm:$0xf]  ;;  %v827_v0 = vld [vmem:[%s1452_s1 + $0x50] sm:$0xf0]  ;;  %v822_v3 = vor.u32 %v1037_v59, %v819_v60 }
  0x15   :  { %561 = vmatpush.bf16.msra.mxu3 %v1070_v19  ;;  %v1078_v1 = vld [vmem:[%s1450_s0 + $0x118] sm:$0xff]  ;;  %v826_v4 = vor.u32 %v1041_v62, %v825_v61  ;;  %v830_v5 = vor.u32 %v1038_v63, %v827_v0  ;;  %v1077_v7 = vld [vmem:[%s1450_s0 + $0x110] sm:$0xff]  ;;  %v1076_v9 = vld [vmem:[%s1450_s0 + $0x108] sm:$0xff] }
  0x16   :  { %505 = vmatpush.bf16.msra.mxu0 %v1045_v22  ;;  %v1086_v6 = vld [vmem:[%s1450_s0 + $0x158] sm:$0xff]  ;;  %v1085_v8 = vld [vmem:[%s1450_s0 + $0x150] sm:$0xff]  ;;  %v1084_v10 = vld [vmem:[%s1450_s0 + $0x148] sm:$0xff] }
  0x17   :  { %524 = vmatpush.bf16.msra.mxu1 %v1053_v23  ;;  %v1075_v11 = vld [vmem:[%s1450_s0 + $0x100] sm:$0xff]  ;;  %v809_v13 = vld [vmem:[%s1452_s1 + $0x10] sm:$0xf]  ;;  %v1036_v14 = vld [vmem:[%s1452_s1 + $0x24] sm:$0xf0] }
  0x18   :  { %543 = vmatpush.bf16.msra.mxu2 %v1061_v24  ;;  %v1083_v12 = vld [vmem:[%s1450_s0 + $0x140] sm:$0xff]  ;;  %v1042_v16 = vld [vmem:[%s1452_s1 + $0x54] sm:$0xf0]  ;;  %v1033_v17 = vld [vmem:[%s1452_s1 + $0x14] sm:$0xf]  ;;  %v810_v21 = vor.u32 %v1036_v14, %v809_v13 }
  0x19   :  { %562 = vmatpush.bf16.msra.mxu3 %v1069_v25  ;;  %v833_v15 = vld [vmem:[%s1452_s1 + $0x40] sm:$0xf]  ;;  %v811_v18 = vld [vmem:[%s1452_s1 + $0x28] sm:$0xf0]  ;;  %v1039_v19 = vld [vmem:[%s1452_s1 + $0x44] sm:$0xf] }
  0x1a   :  { %506 = vmatpush.bf16.msra.mxu0 %v1044_v26  ;;  %v835_v20 = vld [vmem:[%s1452_s1 + $0x58] sm:$0xf0]  ;;  %v834_v22 = vor.u32 %v1042_v16, %v833_v15  ;;  %v814_v23 = vor.u32 %v1033_v17, %v811_v18  ;;  %v738_v17 = vld [vmem:[%s1453_s4] sm:$0xff]  ;;  %v1123_v18 = vmov 32.0  }
  0x1b   :  { %525 = vmatpush.bf16.msra.mxu1 %v1052_v27  ;;  %v838_v24 = vor.u32 %v1039_v19, %v835_v20  ;;  %1112 = vrcp.f32 %v1123_v18  ;;  %v663_v18 = vld [vmem:[%s1454_s3 + $0x8] sm:$0xff] }
  0x1c   :  { %544 = vmatpush.bf16.msra.mxu2 %v1060_v29 }
  0x1d   :  { %563 = vmatpush.bf16.msra.mxu3 %v1068_v30 }
  0x1e   :  { %507 = vmatpush.bf16.msra.mxu0 %v1043_v31 }
  0x1f   :  { %526 = vmatpush.bf16.msra.mxu1 %v1051_v32 }
  0x20   :  { %545 = vmatpush.bf16.msra.mxu2 %v1059_v33 }
  0x21   :  { %564 = vmatpush.bf16.msra.mxu3 %v1067_v34  ;;  %508 = vmatmul.bf16.vlgmr.msra.gmra.mxu0 %v794_v45  ;;  %v1113_v19 = vpop.eup %1112 }
  0x22   :  { %576 = vmatpush.bf16.msrb.mxu0 %v1082_v44  ;;  %527 = vmatmul.bf16.vlgmr.msra.gmra.mxu1 %v798_v46  ;;  %v628_v20 = vmul.f32 32.0, %v1113_v19  ;;  %vm632_vm1 = vweird.f32 %v1113_v19 }
  0x23   :  { %546 = vmatmul.bf16.vlgmr.msra.gmra.mxu2 %v802_v47  ;;  %595 = vmatpush.bf16.msrb.mxu1 %v1090_v49 }
  0x24   :  { %1091 = vmatpush.bf16.msrb.mxu2 %v1082_v44  ;;  %565 = vmatmul.bf16.vlgmr.msra.gmra.mxu3 %v806_v48 }
  0x25   :  { %1099 = vmatpush.bf16.msrb.mxu3 %v1090_v49 }
  0x26   :  { %577 = vmatpush.bf16.msrb.mxu0 %v1081_v50 }
  0x27   :  { %596 = vmatpush.bf16.msrb.mxu1 %v1089_v51 }
  0x28   :  { %1092 = vmatpush.bf16.msrb.mxu2 %v1081_v50 }
  0x29   :  { %1100 = vmatpush.bf16.msrb.mxu3 %v1089_v51 }
  0x2a   :  { %578 = vmatpush.bf16.msrb.mxu0 %v1080_v53 }
  0x2b   :  { %597 = vmatpush.bf16.msrb.mxu1 %v1088_v54 }
  0x2c   :  { %1093 = vmatpush.bf16.msrb.mxu2 %v1080_v53 }
  0x2d   :  { %1101 = vmatpush.bf16.msrb.mxu3 %v1088_v54 }
  0x2e   :  { %579 = vmatpush.bf16.msrb.mxu0 %v1079_v55 }
  0x2f   :  { %598 = vmatpush.bf16.msrb.mxu1 %v1087_v56 }
  0x30   :  { %1094 = vmatpush.bf16.msrb.mxu2 %v1079_v55 }
  0x31   :  { %1102 = vmatpush.bf16.msrb.mxu3 %v1087_v56  ;;  %513 = vmatmul.bf16.gmra.mxu0 %v818_v2 }
  0x32   :  { %580 = vmatpush.bf16.msrb.mxu0 %v1078_v1  ;;  %532 = vmatmul.bf16.gmra.mxu1 %v822_v3 }
  0x33   :  { %551 = vmatmul.bf16.gmra.mxu2 %v826_v4  ;;  %599 = vmatpush.bf16.msrb.mxu1 %v1086_v6 }
  0x34   :  { %1095 = vmatpush.bf16.msrb.mxu2 %v1078_v1  ;;  %570 = vmatmul.bf16.gmra.mxu3 %v830_v5 }
  0x35   :  { %1103 = vmatpush.bf16.msrb.mxu3 %v1086_v6 }
  0x36   :  { %581 = vmatpush.bf16.msrb.mxu0 %v1077_v7 }
  0x37   :  { %600 = vmatpush.bf16.msrb.mxu1 %v1085_v8 }
  0x38   :  { %1096 = vmatpush.bf16.msrb.mxu2 %v1077_v7 }
  0x39   :  { %1104 = vmatpush.bf16.msrb.mxu3 %v1085_v8 }
  0x3a   :  { %582 = vmatpush.bf16.msrb.mxu0 %v1076_v9 }
  0x3b   :  { %601 = vmatpush.bf16.msrb.mxu1 %v1084_v10 }
  0x3c   :  { %1097 = vmatpush.bf16.msrb.mxu2 %v1076_v9 }
  0x3d   :  { %1105 = vmatpush.bf16.msrb.mxu3 %v1084_v10 }
  0x3e   :  { %583 = vmatpush.bf16.msrb.mxu0 %v1075_v11 }
  0x3f   :  { %602 = vmatpush.bf16.msrb.mxu1 %v1083_v12 }
  0x40   :  { %1098 = vmatpush.bf16.msrb.mxu2 %v1075_v11 }
  0x41   :  { %1106 = vmatpush.bf16.msrb.mxu3 %v1083_v12  ;;  %584 = vmatmul.bf16.vlgmr.msrb.gmra.mxu0 %v810_v21  ;;  %v629_v21 = vsub.f32 1.0, %v628_v20 }
  0x42   :  { %603 = vmatmul.bf16.vlgmr.msrb.gmra.mxu1 %v814_v23 }
  0x43   :  { %589 = vmatmul.bf16.vlgmr.msrb.gmra.mxu2 %v834_v22  ;;  %v630_v22 = vmul.f32 %v1113_v19, %v629_v21  ;;  %v740_v21 = vld [vmem:[%s1453_s4 + $0x10] sm:$0xff] }
  0x44   :  { %608 = vmatmul.bf16.vlgmr.msrb.gmra.mxu3 %v838_v24 }
  0x45   :  { %v631_v23 = vadd.f32 %v1113_v19, %v630_v22 }
  0x47   :  { %v633_v24 = vsel %vm632_vm1, %v1113_v19, %v631_v23 }
  0x7c   :  { %v135_v31 = vpop.permute.xlu0 %134 }
  0x7e   :  { %v145_v37 = vpop.permute.xlu1 %144 }
  0x84   :  { %v140_v43 = vpop.permute.xlu0 %139 }
  0x86   :  { %v150_v53 = vpop.permute.xlu1 %149 }
  0x9e   :  { %v509_v25 = vpop.f32.mrf.mxu0 }
  0x9f   :  { %v528_v26 = vpop.f32.mrf.mxu1  ;;  %v510_v36 = vadd.f32 %v509_v25, %v135_v31 }
  0xa1   :  { %v529_v42 = vadd.f32 %v528_v26, %v510_v36 }
  0xa6   :  { %v547_v27 = vpop.f32.mrf.mxu2  ;;  %v511_v29 = vpop.f32.mrf.mxu0 }
  0xa7   :  { %v566_v28 = vpop.f32.mrf.mxu3  ;;  %v530_v30 = vpop.f32.mrf.mxu1  ;;  %v548_v44 = vadd.f32 %v547_v27, %v529_v42  ;;  %v512_v46 = vadd.f32 %v511_v29, %v140_v43 }
  0xa9   :  { %v567_v47 = vadd.f32 %v566_v28, %v548_v44  ;;  %v531_v52 = vadd.f32 %v530_v30, %v512_v46 }
  0xae   :  { %v549_v32 = vpop.f32.mrf.mxu2  ;;  %v514_v34 = vpop.f32.mrf.mxu0 }
  0xaf   :  { %v568_v33 = vpop.f32.mrf.mxu3  ;;  %v533_v35 = vpop.f32.mrf.mxu1  ;;  %v515_v45 = vadd.f32 %v514_v34, %v145_v37  ;;  %v550_v57 = vadd.f32 %v549_v32, %v531_v52 }
  0xb1   :  { %v534_v50 = vadd.f32 %v533_v35, %v515_v45  ;;  %v569_v62 = vadd.f32 %v568_v33, %v550_v57 }
  0xb6   :  { %v552_v38 = vpop.f32.mrf.mxu2  ;;  %v516_v40 = vpop.f32.mrf.mxu0 }
  0xb7   :  { %v571_v39 = vpop.f32.mrf.mxu3  ;;  %v535_v41 = vpop.f32.mrf.mxu1  ;;  %v553_v56 = vadd.f32 %v552_v38, %v534_v50  ;;  %v517_v59 = vadd.f32 %v516_v40, %v150_v53 }
  0xb9   :  { %v572_v61 = vadd.f32 %v571_v39, %v553_v56  ;;  %v536_v0 = vadd.f32 %v535_v41, %v517_v59 }
  0xbe   :  { %v554_v48 = vpop.f32.mrf.mxu2  ;;  %v585_v51 = vpop.f32.mrf.mxu0 }
  0xbf   :  { %v573_v49 = vpop.f32.mrf.mxu3  ;;  %v586_v54 = vadd.f32 %v585_v51, %v567_v47  ;;  %v604_v55 = vpop.f32.mrf.mxu1  ;;  %v555_v5 = vadd.f32 %v554_v48, %v536_v0 }
  0xc1   :  { %v605_v58 = vadd.f32 %v604_v55, %v586_v54  ;;  %v574_v11 = vadd.f32 %v573_v49, %v555_v5 }
  0xc3   :  { %v615_v60 = vsel %vm614_vm0, %v605_v58, 0.0 }
  0xc4   :  { %616 = vadd.xlane.f32.xlu2 %v615_v60 }
  0xc6   :  { %v590_v63 = vpop.f32.mrf.mxu2  ;;  %v587_v3 = vpop.f32.mrf.mxu0 }
  0xc7   :  { %v591_v1 = vadd.f32 %v590_v63, %v572_v61  ;;  %v609_v2 = vpop.f32.mrf.mxu3  ;;  %v588_v4 = vadd.f32 %v587_v3, %v569_v62  ;;  %v606_v7 = vpop.f32.mrf.mxu1  ;;  %v662_v61 = vld [vmem:[%s1454_s3] sm:$0xff] }
  0xc9   :  { %v610_v6 = vadd.f32 %v609_v2, %v591_v1  ;;  %v607_v8 = vadd.f32 %v606_v7, %v588_v4 }
  0xcb   :  { %v621_v9 = vsel %vm614_vm0, %v610_v6, 0.0  ;;  %v618_v10 = vsel %vm614_vm0, %v607_v8, 0.0 }
  0xcc   :  { %622 = vadd.xlane.f32.xlu0 %v621_v9  ;;  %619 = vadd.xlane.f32.xlu2 %v618_v10  ;;  %v664_v9 = vld [vmem:[%s1454_s3 + $0x10] sm:$0xff] }
  0xce   :  { %v592_v12 = vpop.f32.mrf.mxu2 }
  0xcf   :  { %v593_v13 = vadd.f32 %v592_v12, %v574_v11  ;;  %v611_v14 = vpop.f32.mrf.mxu3 }
  0xd1   :  { %v612_v15 = vadd.f32 %v611_v14, %v593_v13 }
  0xd3   :  { %v624_v16 = vsel %vm614_vm0, %v612_v15, 0.0 }
  0xd4   :  { %625 = vadd.xlane.f32.xlu1 %v624_v16 }
  0xe0   :  { %744 = vperm.xlu0 %1109, %v738_v17  }
 0x137   :  { %v617_v25 = vpop.xlane.xlu2 %616 }
 0x138   :  { %v634_v26 = vmul.f32 %v633_v24, %v617_v25 }
 0x13a   :  { %v1389_v27 = vsub.f32 %v605_v58, %v634_v26  ;;  %v665_v26 = vld [vmem:[%s1454_s3 + $0x18] sm:$0xff] }
 0x13c   :  { %v642_v28 = vmul.f32 %v1389_v27, %v1389_v27 }
 0x13e   :  { %v646_v30 = vsel %vm614_vm0, %v642_v28, 0.0 }
 0x13f   :  { %v623_v29 = vpop.xlane.xlu0 %622  ;;  %647 = vadd.xlane.f32.xlu2 %v646_v30  ;;  %v620_v32 = vpop.xlane.xlu2 %619 }
 0x140   :  { %v636_v31 = vmul.f32 %v633_v24, %v623_v29  ;;  %v635_v34 = vmul.f32 %v633_v24, %v620_v32  ;;  %v741_v29 = vld [vmem:[%s1453_s4 + $0x18] sm:$0xff]  ;;  %v739_v32 = vld [vmem:[%s1453_s4 + $0x8] sm:$0xff] }
 0x142   :  { %v1394_v33 = vsub.f32 %v610_v6, %v636_v31  ;;  %v1398_v36 = vsub.f32 %v607_v8, %v635_v34 }
 0x144   :  { %v644_v35 = vmul.f32 %v1394_v33, %v1394_v33  ;;  %v643_v40 = vmul.f32 %v1398_v36, %v1398_v36 }
 0x146   :  { %v652_v37 = vsel %vm614_vm0, %v644_v35, 0.0  ;;  %v649_v42 = vsel %vm614_vm0, %v643_v40, 0.0 }
 0x147   :  { %v626_v38 = vpop.xlane.xlu1 %625  ;;  %653 = vadd.xlane.f32.xlu2 %v652_v37 }
 0x148   :  { %v637_v39 = vmul.f32 %v633_v24, %v626_v38 }
 0x14a   :  { %v1403_v41 = vsub.f32 %v612_v15, %v637_v39 }
 0x14c   :  { %v645_v43 = vmul.f32 %v1403_v41, %v1403_v41 }
 0x14e   :  { %v655_v44 = vsel %vm614_vm0, %v645_v43, 0.0 }
 0x14f   :  { %650 = vadd.xlane.f32.xlu2 %v649_v42 }
 0x152   :  { %v745_v37 = vpop.permute.xlu0 %744 }
 0x157   :  { %656 = vadd.xlane.f32.xlu2 %v655_v44 }
 0x1b2   :  { %v648_v45 = vpop.xlane.xlu2 %647 }
 0x1b3   :  { %v658_v46 = vmul.f32 %v648_v45, %v633_v24 }
 0x1b5   :  { %v666_v47 = vadd.f32 1e-05, %v658_v46 }
 0x1b7   :  { %1114 = vrsqrt.f32 %v666_v47  ;;  %vm676_vm3 = vweird.f32 %v666_v47 }
 0x1ba   :  { %v654_v48 = vpop.xlane.xlu2 %653 }
 0x1bb   :  { %v660_v49 = vmul.f32 %v654_v48, %v633_v24 }
 0x1bd   :  { %v1115_v50 = vpop.eup %1114  ;;  %v668_v51 = vadd.f32 1e-05, %v660_v49 }
 0x1be   :  { %v671_v52 = vmul.f32 %v1115_v50, %v666_v47  ;;  %vm677_vm2 = vweird.f32 %v1115_v50 }
 0x1bf   :  { %1116 = vrsqrt.f32 %v668_v51  ;;  %vm678_vm4 = vmor %vm676_vm3, %vm677_vm2  ;;  %vm696_vm6 = vweird.f32 %v668_v51 }
 0x1c0   :  { %v672_v53 = vmul.f32 %v1115_v50, %v671_v52 }
 0x1c2   :  { %v673_v54 = vmul.f32 0.5, %v672_v53  ;;  %v651_v55 = vpop.xlane.xlu2 %650 }
 0x1c3   :  { %v659_v56 = vmul.f32 %v651_v55, %v633_v24 }
 0x1c4   :  { %v674_v57 = vsub.f32 1.5, %v673_v54 }
 0x1c5   :  { %v1117_v58 = vpop.eup %1116  ;;  %v667_v59 = vadd.f32 1e-05, %v659_v56 }
 0x1c6   :  { %v691_v60 = vmul.f32 %v1117_v58, %v668_v51  ;;  %v675_v62 = vmul.f32 %v1115_v50, %v674_v57  ;;  %vm697_vm5 = vweird.f32 %v1117_v58 }
 0x1c7   :  { %1118 = vrsqrt.f32 %v667_v59  ;;  %vm698_vm7 = vmor %vm696_vm6, %vm697_vm5  ;;  %vm686_vm9 = vweird.f32 %v667_v59 }
 0x1c8   :  { %v692_v63 = vmul.f32 %v1117_v58, %v691_v60  ;;  %v679_v0 = vsel %vm678_vm4, %v1115_v50, %v675_v62 }
 0x1c9   :  { %v710_v1 = vmul.f32 %v679_v0, %v662_v61 }
 0x1ca   :  { %v693_v2 = vmul.f32 0.5, %v692_v63  ;;  %v657_v3 = vpop.xlane.xlu2 %656 }
 0x1cb   :  { %v661_v4 = vmul.f32 %v657_v3, %v633_v24  ;;  %716 = vperm.xlu2 %1111, %v710_v1  }
 0x1cc   :  { %v694_v5 = vsub.f32 1.5, %v693_v2 }
 0x1cd   :  { %v1119_v6 = vpop.eup %1118  ;;  %v669_v7 = vadd.f32 1e-05, %v661_v4 }
 0x1ce   :  { %v681_v8 = vmul.f32 %v1119_v6, %v667_v59  ;;  %v695_v10 = vmul.f32 %v1117_v58, %v694_v5  ;;  %vm687_vm8 = vweird.f32 %v1119_v6 }
 0x1cf   :  { %1120 = vrsqrt.f32 %v669_v7  ;;  %vm688_vm10 = vmor %vm686_vm9, %vm687_vm8  ;;  %vm706_vm12 = vweird.f32 %v669_v7 }
 0x1d0   :  { %v682_v11 = vmul.f32 %v1119_v6, %v681_v8  ;;  %v699_v12 = vsel %vm698_vm7, %v1117_v58, %v695_v10 }
 0x1d1   :  { %v712_v13 = vmul.f32 %v699_v12, %v664_v9 }
 0x1d2   :  { %v683_v14 = vmul.f32 0.5, %v682_v11 }
 0x1d3   :  { %726 = vperm.xlu1 %1110, %v712_v13  }
 0x1d4   :  { %v684_v15 = vsub.f32 1.5, %v683_v14 }
 0x1d5   :  { %v1121_v16 = vpop.eup %1120 }
 0x1d6   :  { %v701_v17 = vmul.f32 %v1121_v16, %v669_v7  ;;  %v685_v19 = vmul.f32 %v1119_v6, %v684_v15  ;;  %vm707_vm11 = vweird.f32 %v1121_v16 }
 0x1d7   :  { %vm708_vm13 = vmor %vm706_vm12, %vm707_vm11 }
 0x1d8   :  { %v702_v20 = vmul.f32 %v1121_v16, %v701_v17  ;;  %v689_v22 = vsel %vm688_vm10, %v1119_v6, %v685_v19 }
 0x1d9   :  { %v711_v23 = vmul.f32 %v689_v22, %v663_v18 }
 0x1da   :  { %v703_v24 = vmul.f32 0.5, %v702_v20 }
 0x1db   :  { %754 = vperm.xlu1 %1110, %v740_v21   ;;  %721 = vperm.xlu0 %1109, %v711_v23  }
 0x1dc   :  { %v704_v25 = vsub.f32 1.5, %v703_v24 }
 0x1de   :  { %v705_v28 = vmul.f32 %v1121_v16, %v704_v25 }
 0x1e0   :  { %v709_v30 = vsel %vm708_vm13, %v1121_v16, %v705_v28 }
 0x1e1   :  { %v713_v31 = vmul.f32 %v709_v30, %v665_v26 }
 0x1e3   :  { %759 = vperm.xlu0 %1109, %v741_v29   ;;  %731 = vperm.xlu2 %1111, %v713_v31  }
 0x1eb   :  { %749 = vperm.xlu2 %1111, %v739_v32  }
 0x225   :  { %v717_v34 = vpop.permute.xlu2 %716 }
 0x226   :  { %v734_v35 = vmul.f32 %v717_v34, %v1389_v27 }
 0x228   :  { %v762_v38 = vadd.f32 %v745_v37, %v734_v35 }
 0x22a   :  { %vm766_vm14 = vcmp.ge.f32.partialorder %v762_v38, 0.0  ;;  %v770_v39 = vmul.f32 0.2, %v762_v38 }
 0x22c   :  { %v774_v40 = vsel %vm766_vm14, %v762_v38, %v770_v39 }
 0x22d   :  { %v778_v42 = vpack.c.bf16 %v774_v40, %v774_v40 }
 0x22f   :  { %783 = vst.msk [vmem:[%s1455_s5] sm:$0xf] %vm782_vm15, %v778_v42 }
 0x23d   :  { %v732_v43 = vpop.permute.xlu2 %731 }
 0x23e   :  { %v737_v55 = vmul.f32 %v732_v43, %v1403_v41 }
 0x245   :  { %v727_v44 = vpop.permute.xlu1 %726  ;;  %v750_v49 = vpop.permute.xlu2 %749 }
 0x246   :  { %v736_v45 = vmul.f32 %v727_v44, %v1394_v33 }
 0x24d   :  { %v755_v46 = vpop.permute.xlu1 %754  ;;  %v722_v47 = vpop.permute.xlu0 %721 }
 0x24e   :  { %v764_v48 = vadd.f32 %v755_v46, %v736_v45  ;;  %v735_v27 = vmul.f32 %v722_v47, %v1398_v36 }
 0x250   :  { %vm768_vm0 = vcmp.ge.f32.partialorder %v764_v48, 0.0  ;;  %v772_v50 = vmul.f32 0.2, %v764_v48  ;;  %v763_v51 = vadd.f32 %v750_v49, %v735_v27 }
 0x252   :  { %v776_v52 = vsel %vm768_vm0, %v764_v48, %v772_v50  ;;  %vm767_vm1 = vcmp.ge.f32.partialorder %v763_v51, 0.0  ;;  %v771_v53 = vmul.f32 0.2, %v763_v51 }
 0x253   :  { %v780_v54 = vpack.c.bf16 %v776_v52, %v776_v52 }
 0x254   :  { %v775_v56 = vsel %vm767_vm1, %v763_v51, %v771_v53 }
 0x255   :  { %785 = vst.msk [vmem:[%s1455_s5 + $0x8] sm:$0xf] %vm782_vm15, %v780_v54  ;;  %v779_v33 = vpack.c.bf16 %v775_v56, %v775_v56  ;;  %v760_v57 = vpop.permute.xlu0 %759 }
 0x256   :  { %v765_v58 = vadd.f32 %v760_v57, %v737_v55 }
 0x257   :  { %784 = vst.msk [vmem:[%s1455_s5 + $0x4] sm:$0xf] %vm782_vm15, %v779_v33 }
 0x258   :  { %vm769_vm2 = vcmp.ge.f32.partialorder %v765_v58, 0.0  ;;  %v773_v36 = vmul.f32 0.2, %v765_v58 }
 0x25a   :  { %v777_v59 = vsel %vm769_vm2, %v765_v58, %v773_v36 }
 0x25b   :  { %v781_v60 = vpack.c.bf16 %v777_v59, %v777_v59 }
 0x25d   :  { %786 = vst.msk [vmem:[%s1455_s5 + $0xc] sm:$0xf] %vm782_vm15, %v781_v60 }

// kernel: _lambda_.9
= control target key start
LH: loop header
LB: loop body
LE: loop exit
PB: predicated region body
PF: predicated region fallthrough
CT: control target
= control target key end

     0   :  { %v816_v8 = vmov 0   ;;  %vm424_vm0 = vcmask 31744   ;;  %vm592_vm15 = vcmask 27648   ;;  %s1072_s0 = inlined_call_operand.vmem [shape: bf16[512,4], index: 0, kind: input, shape index: {}]   ;;  %s1073_s2 = inlined_call_operand.vmem [shape: f32[32,1], index: 2, kind: input, shape index: {}]   ;;  %s1074_s1 = inlined_call_operand.vmem [shape: bf16[32,512], index: 1, kind: input, shape index: {}]   ;;  %s1075_s4 = inlined_call_operand.vmem [shape: f32[32,1], index: 4, kind: input, shape index: {}]   ;;  %s1076_s3 = inlined_call_operand.vmem [shape: f32[32,1], index: 3, kind: input, shape index: {}]   ;;  %s1077_s5 = inlined_call_operand.vmem [shape: bf16[32,4], index: 5, kind: output, shape index: {}]  }
   0x1   :  { %v776_v0 = vld [vmem:[%s1072_s0 + $0x38] sm:$0xff]  ;;  %v775_v4 = vld [vmem:[%s1072_s0 + $0x30] sm:$0xff]  ;;  %803 = vset.pattern.permute.xlu0 %v816_v8  ;;  %804 = vset.pattern.permute.xlu1 %v816_v8  ;;  %v774_v9 = vld [vmem:[%s1072_s0 + $0x28] sm:$0xff] }
   0x2   :  { %v784_v1 = vld [vmem:[%s1072_s0 + $0x78] sm:$0xff]  ;;  %348 = vmatpush.bf16.msra.mxu0 %v776_v0  ;;  %v783_v5 = vld [vmem:[%s1072_s0 + $0x70] sm:$0xff]  ;;  %805 = vset.pattern.permute.xlu2 %v816_v8  ;;  %v782_v10 = vld [vmem:[%s1072_s0 + $0x68] sm:$0xff] }
   0x3   :  { %v792_v2 = vld [vmem:[%s1072_s0 + $0xb8] sm:$0xff]  ;;  %367 = vmatpush.bf16.msra.mxu1 %v784_v1  ;;  %v791_v6 = vld [vmem:[%s1072_s0 + $0xb0] sm:$0xff]  ;;  %v790_v11 = vld [vmem:[%s1072_s0 + $0xa8] sm:$0xff] }
   0x4   :  { %v800_v3 = vld [vmem:[%s1072_s0 + $0xf8] sm:$0xff]  ;;  %386 = vmatpush.bf16.msra.mxu2 %v792_v2  ;;  %v799_v7 = vld [vmem:[%s1072_s0 + $0xf0] sm:$0xff]  ;;  %v798_v12 = vld [vmem:[%s1072_s0 + $0xe8] sm:$0xff] }
   0x5   :  { %405 = vmatpush.bf16.msra.mxu3 %v800_v3  ;;  %v773_v13 = vld [vmem:[%s1072_s0 + $0x20] sm:$0xff]  ;;  %v772_v18 = vld [vmem:[%s1072_s0 + $0x18] sm:$0xff]  ;;  %v771_v22 = vld [vmem:[%s1072_s0 + $0x10] sm:$0xff] }
   0x6   :  { %349 = vmatpush.bf16.msra.mxu0 %v775_v4  ;;  %v781_v14 = vld [vmem:[%s1072_s0 + $0x60] sm:$0xff]  ;;  %v780_v19 = vld [vmem:[%s1072_s0 + $0x58] sm:$0xff]  ;;  %v779_v23 = vld [vmem:[%s1072_s0 + $0x50] sm:$0xff] }
   0x7   :  { %368 = vmatpush.bf16.msra.mxu1 %v783_v5  ;;  %v789_v15 = vld [vmem:[%s1072_s0 + $0xa0] sm:$0xff]  ;;  %v788_v20 = vld [vmem:[%s1072_s0 + $0x98] sm:$0xff]  ;;  %v94_v24 = vld [vmem:[%s1073_s2 + $0x10] sm:$0xff] }
   0x8   :  { %387 = vmatpush.bf16.msra.mxu2 %v791_v6  ;;  %v797_v16 = vld [vmem:[%s1072_s0 + $0xe0] sm:$0xff]  ;;  %v796_v21 = vld [vmem:[%s1072_s0 + $0xd8] sm:$0xff]  ;;  %v787_v25 = vld [vmem:[%s1072_s0 + $0x90] sm:$0xff]  ;;  %108 = vperm.xlu1 %804, %v94_v24  }
   0x9   :  { %406 = vmatpush.bf16.msra.mxu3 %v799_v7  ;;  %v92_v17 = vld [vmem:[%s1073_s2] sm:$0xff]  ;;  %v795_v26 = vld [vmem:[%s1072_s0 + $0xd0] sm:$0xff]  ;;  %v93_v27 = vld [vmem:[%s1073_s2 + $0x8] sm:$0xff] }
   0xa   :  { %350 = vmatpush.bf16.msra.mxu0 %v774_v9  ;;  %98 = vperm.xlu0 %803, %v92_v17   ;;  %v770_v28 = vld [vmem:[%s1072_s0 + $0x8] sm:$0xff]  ;;  %v769_v32 = vld [vmem:[%s1072_s0] sm:$0xff]  ;;  %v763_v37 = vld [vmem:[%s1074_s1 + $0xc] sm:$0xf0] }
   0xb   :  { %369 = vmatpush.bf16.msra.mxu1 %v782_v10  ;;  %v778_v29 = vld [vmem:[%s1072_s0 + $0x48] sm:$0xff]  ;;  %v777_v33 = vld [vmem:[%s1072_s0 + $0x40] sm:$0xff]  ;;  %v95_v38 = vld [vmem:[%s1073_s2 + $0x18] sm:$0xff] }
   0xc   :  { %388 = vmatpush.bf16.msra.mxu2 %v790_v11  ;;  %v786_v30 = vld [vmem:[%s1072_s0 + $0x88] sm:$0xff]  ;;  %v785_v34 = vld [vmem:[%s1072_s0 + $0x80] sm:$0xff]  ;;  %v605_v40 = vld [vmem:[%s1074_s1 + $0x10] sm:$0xf0] }
   0xd   :  { %407 = vmatpush.bf16.msra.mxu3 %v798_v12  ;;  %v794_v31 = vld [vmem:[%s1072_s0 + $0xc8] sm:$0xff]  ;;  %v793_v35 = vld [vmem:[%s1072_s0 + $0xc0] sm:$0xff]  ;;  %v764_v42 = vld [vmem:[%s1074_s1 + $0x14] sm:$0xf0] }
   0xe   :  { %351 = vmatpush.bf16.msra.mxu0 %v773_v13  ;;  %v603_v36 = vld [vmem:[%s1074_s1] sm:$0xf]  ;;  %v761_v39 = vld [vmem:[%s1074_s1 + $0x4] sm:$0xf]  ;;  %v611_v41 = vld [vmem:[%s1074_s1 + $0x8] sm:$0xf] }
   0xf   :  { %370 = vmatpush.bf16.msra.mxu1 %v781_v14  ;;  %v762_v43 = vld [vmem:[%s1074_s1 + $0xc] sm:$0xf]  ;;  %v613_v44 = vld [vmem:[%s1074_s1 + $0x18] sm:$0xf0]  ;;  %v604_v45 = vor.u32 %v763_v37, %v603_v36  ;;  %v608_v46 = vor.u32 %v761_v39, %v605_v40  ;;  %v612_v47 = vor.u32 %v764_v42, %v611_v41  ;;  %v619_v49 = vld [vmem:[%s1074_s1 + $0x20] sm:$0xf] }
  0x10   :  { %389 = vmatpush.bf16.msra.mxu2 %v789_v15  ;;  %113 = vperm.xlu1 %804, %v95_v38   ;;  %v616_v48 = vor.u32 %v762_v43, %v613_v44  ;;  %v767_v50 = vld [vmem:[%s1074_s1 + $0x2c] sm:$0xf0]  ;;  %v765_v51 = vld [vmem:[%s1074_s1 + $0x24] sm:$0xf]  ;;  %v621_v52 = vld [vmem:[%s1074_s1 + $0x30] sm:$0xf0] }
  0x11   :  { %408 = vmatpush.bf16.msra.mxu3 %v797_v16  ;;  %v627_v53 = vld [vmem:[%s1074_s1 + $0x28] sm:$0xf]  ;;  %v768_v54 = vld [vmem:[%s1074_s1 + $0x34] sm:$0xf0]  ;;  %v766_v55 = vld [vmem:[%s1074_s1 + $0x2c] sm:$0xf]  ;;  %v620_v57 = vor.u32 %v767_v50, %v619_v49  ;;  %v624_v58 = vor.u32 %v765_v51, %v621_v52 }
  0x12   :  { %352 = vmatpush.bf16.msra.mxu0 %v772_v18  ;;  %103 = vperm.xlu0 %803, %v93_v27   ;;  %v629_v56 = vld [vmem:[%s1074_s1 + $0x38] sm:$0xf0]  ;;  %v628_v59 = vor.u32 %v768_v54, %v627_v53  ;;  %v548_v37 = vld [vmem:[%s1075_s4] sm:$0xff]  ;;  %v817_v38 = vmov 4.0  }
  0x13   :  { %371 = vmatpush.bf16.msra.mxu1 %v780_v19  ;;  %v632_v60 = vor.u32 %v766_v55, %v629_v56  ;;  %806 = vrcp.f32 %v817_v38  ;;  %v474_v38 = vld [vmem:[%s1076_s3 + $0x10] sm:$0xff] }
  0x14   :  { %390 = vmatpush.bf16.msra.mxu2 %v788_v20 }
  0x15   :  { %409 = vmatpush.bf16.msra.mxu3 %v796_v21 }
  0x16   :  { %353 = vmatpush.bf16.msra.mxu0 %v771_v22 }
  0x17   :  { %372 = vmatpush.bf16.msra.mxu1 %v779_v23 }
  0x18   :  { %391 = vmatpush.bf16.msra.mxu2 %v787_v25 }
  0x19   :  { %410 = vmatpush.bf16.msra.mxu3 %v795_v26  ;;  %v807_v39 = vpop.eup %806 }
  0x1a   :  { %354 = vmatpush.bf16.msra.mxu0 %v770_v28  ;;  %v438_v40 = vmul.f32 4.0, %v807_v39  ;;  %vm442_vm1 = vweird.f32 %v807_v39 }
  0x1b   :  { %373 = vmatpush.bf16.msra.mxu1 %v778_v29 }
  0x1c   :  { %392 = vmatpush.bf16.msra.mxu2 %v786_v30  ;;  %v439_v41 = vsub.f32 1.0, %v438_v40 }
  0x1d   :  { %411 = vmatpush.bf16.msra.mxu3 %v794_v31 }
  0x1e   :  { %355 = vmatpush.bf16.msra.mxu0 %v769_v32  ;;  %v440_v42 = vmul.f32 %v807_v39, %v439_v41  ;;  %v551_v41 = vld [vmem:[%s1075_s4 + $0x18] sm:$0xff] }
  0x1f   :  { %374 = vmatpush.bf16.msra.mxu1 %v777_v33 }
  0x20   :  { %393 = vmatpush.bf16.msra.mxu2 %v785_v34  ;;  %v441_v43 = vadd.f32 %v807_v39, %v440_v42 }
  0x21   :  { %412 = vmatpush.bf16.msra.mxu3 %v793_v35  ;;  %356 = vmatmul.bf16.vlgmr.msra.gmra.mxu0 %v604_v45 }
  0x22   :  { %375 = vmatmul.bf16.vlgmr.msra.gmra.mxu1 %v608_v46  ;;  %v443_v44 = vsel %vm442_vm1, %v807_v39, %v441_v43 }
  0x23   :  { %394 = vmatmul.bf16.vlgmr.msra.gmra.mxu2 %v612_v47 }
  0x24   :  { %413 = vmatmul.bf16.vlgmr.msra.gmra.mxu3 %v616_v48 }
  0x31   :  { %361 = vmatmul.bf16.gmra.mxu0 %v620_v57 }
  0x32   :  { %380 = vmatmul.bf16.gmra.mxu1 %v624_v58 }
  0x33   :  { %399 = vmatmul.bf16.gmra.mxu2 %v628_v59 }
  0x34   :  { %418 = vmatmul.bf16.gmra.mxu3 %v632_v60 }
  0x7a   :  { %v109_v12 = vpop.permute.xlu1 %108 }
  0x7c   :  { %v99_v61 = vpop.permute.xlu0 %98 }
  0x82   :  { %v114_v26 = vpop.permute.xlu1 %113 }
  0x84   :  { %v104_v6 = vpop.permute.xlu0 %103 }
  0x9e   :  { %v357_v62 = vpop.f32.mrf.mxu0 }
  0x9f   :  { %v376_v63 = vpop.f32.mrf.mxu1  ;;  %v358_v0 = vadd.f32 %v357_v62, %v99_v61 }
  0xa1   :  { %v377_v1 = vadd.f32 %v376_v63, %v358_v0 }
  0xa6   :  { %v395_v2 = vpop.f32.mrf.mxu2  ;;  %v359_v5 = vpop.f32.mrf.mxu0 }
  0xa7   :  { %v414_v3 = vpop.f32.mrf.mxu3  ;;  %v396_v4 = vadd.f32 %v395_v2, %v377_v1  ;;  %v378_v7 = vpop.f32.mrf.mxu1  ;;  %v360_v9 = vadd.f32 %v359_v5, %v104_v6 }
  0xa9   :  { %v415_v8 = vadd.f32 %v414_v3, %v396_v4  ;;  %v379_v11 = vadd.f32 %v378_v7, %v360_v9 }
  0xab   :  { %v425_v10 = vsel %vm424_vm0, %v415_v8, 0.0 }
  0xac   :  { %426 = vadd.xlane.f32.xlu2 %v425_v10 }
  0xae   :  { %v397_v13 = vpop.f32.mrf.mxu2  ;;  %v362_v16 = vpop.f32.mrf.mxu0 }
  0xaf   :  { %v416_v14 = vpop.f32.mrf.mxu3  ;;  %v398_v15 = vadd.f32 %v397_v13, %v379_v11  ;;  %v363_v17 = vadd.f32 %v362_v16, %v109_v12  ;;  %v381_v19 = vpop.f32.mrf.mxu1 }
  0xb1   :  { %v417_v18 = vadd.f32 %v416_v14, %v398_v15  ;;  %v382_v20 = vadd.f32 %v381_v19, %v363_v17  ;;  %v472_v17 = vld [vmem:[%s1076_s3] sm:$0xff] }
  0xb3   :  { %v428_v21 = vsel %vm424_vm0, %v417_v18, 0.0 }
  0xb4   :  { %429 = vadd.xlane.f32.xlu2 %v428_v21 }
  0xb6   :  { %v400_v22 = vpop.f32.mrf.mxu2  ;;  %v364_v25 = vpop.f32.mrf.mxu0 }
  0xb7   :  { %v419_v23 = vpop.f32.mrf.mxu3  ;;  %v401_v24 = vadd.f32 %v400_v22, %v382_v20  ;;  %v365_v28 = vadd.f32 %v364_v25, %v114_v26  ;;  %v383_v30 = vpop.f32.mrf.mxu1 }
  0xb9   :  { %v420_v27 = vadd.f32 %v419_v23, %v401_v24  ;;  %v384_v31 = vadd.f32 %v383_v30, %v365_v28 }
  0xbb   :  { %v431_v29 = vsel %vm424_vm0, %v420_v27, 0.0 }
  0xbc   :  { %432 = vadd.xlane.f32.xlu0 %v431_v29  ;;  %v473_v29 = vld [vmem:[%s1076_s3 + $0x8] sm:$0xff] }
  0xbe   :  { %v402_v32 = vpop.f32.mrf.mxu2 }
  0xbf   :  { %v403_v33 = vadd.f32 %v402_v32, %v384_v31  ;;  %v421_v34 = vpop.f32.mrf.mxu3 }
  0xc1   :  { %v422_v35 = vadd.f32 %v421_v34, %v403_v33 }
  0xc3   :  { %v434_v36 = vsel %vm424_vm0, %v422_v35, 0.0 }
  0xc4   :  { %435 = vadd.xlane.f32.xlu1 %v434_v36 }
  0xd0   :  { %554 = vperm.xlu0 %803, %v548_v37  }
 0x11f   :  { %v427_v45 = vpop.xlane.xlu2 %426 }
 0x120   :  { %v444_v46 = vmul.f32 %v443_v44, %v427_v45 }
 0x122   :  { %v1011_v47 = vsub.f32 %v415_v8, %v444_v46  ;;  %v475_v46 = vld [vmem:[%s1076_s3 + $0x18] sm:$0xff] }
 0x124   :  { %v452_v48 = vmul.f32 %v1011_v47, %v1011_v47 }
 0x126   :  { %v456_v49 = vsel %vm424_vm0, %v452_v48, 0.0 }
 0x127   :  { %457 = vadd.xlane.f32.xlu2 %v456_v49  ;;  %v430_v50 = vpop.xlane.xlu2 %429  ;;  %v550_v49 = vld [vmem:[%s1075_s4 + $0x10] sm:$0xff] }
 0x128   :  { %v445_v51 = vmul.f32 %v443_v44, %v430_v50 }
 0x12a   :  { %v1016_v52 = vsub.f32 %v417_v18, %v445_v51 }
 0x12c   :  { %v453_v53 = vmul.f32 %v1016_v52, %v1016_v52 }
 0x12e   :  { %v459_v54 = vsel %vm424_vm0, %v453_v53, 0.0  ;;  %v549_v53 = vld [vmem:[%s1075_s4 + $0x8] sm:$0xff] }
 0x12f   :  { %v433_v55 = vpop.xlane.xlu0 %432  ;;  %460 = vadd.xlane.f32.xlu2 %v459_v54 }
 0x130   :  { %v446_v56 = vmul.f32 %v443_v44, %v433_v55 }
 0x132   :  { %v1021_v57 = vsub.f32 %v420_v27, %v446_v56 }
 0x134   :  { %v454_v58 = vmul.f32 %v1021_v57, %v1021_v57 }
 0x136   :  { %v462_v59 = vsel %vm424_vm0, %v454_v58, 0.0 }
 0x137   :  { %v436_v60 = vpop.xlane.xlu1 %435  ;;  %463 = vadd.xlane.f32.xlu2 %v462_v59 }
 0x138   :  { %v447_v61 = vmul.f32 %v443_v44, %v436_v60 }
 0x13a   :  { %v1026_v62 = vsub.f32 %v422_v35, %v447_v61 }
 0x13c   :  { %v455_v63 = vmul.f32 %v1026_v62, %v1026_v62 }
 0x13e   :  { %v465_v0 = vsel %vm424_vm0, %v455_v63, 0.0 }
 0x13f   :  { %466 = vadd.xlane.f32.xlu2 %v465_v0 }
 0x142   :  { %v555_v56 = vpop.permute.xlu0 %554 }
 0x19a   :  { %v458_v1 = vpop.xlane.xlu2 %457 }
 0x19b   :  { %v468_v2 = vmul.f32 %v458_v1, %v443_v44 }
 0x19d   :  { %v476_v3 = vadd.f32 1e-05, %v468_v2 }
 0x19f   :  { %808 = vrsqrt.f32 %v476_v3  ;;  %vm486_vm3 = vweird.f32 %v476_v3 }
 0x1a2   :  { %v461_v4 = vpop.xlane.xlu2 %460 }
 0x1a3   :  { %v469_v5 = vmul.f32 %v461_v4, %v443_v44 }
 0x1a5   :  { %v809_v6 = vpop.eup %808  ;;  %v477_v7 = vadd.f32 1e-05, %v469_v5 }
 0x1a6   :  { %v481_v8 = vmul.f32 %v809_v6, %v476_v3  ;;  %vm487_vm2 = vweird.f32 %v809_v6 }
 0x1a7   :  { %810 = vrsqrt.f32 %v477_v7  ;;  %vm488_vm4 = vmor %vm486_vm3, %vm487_vm2  ;;  %vm496_vm6 = vweird.f32 %v477_v7 }
 0x1a8   :  { %v482_v9 = vmul.f32 %v809_v6, %v481_v8 }
 0x1aa   :  { %v483_v10 = vmul.f32 0.5, %v482_v9  ;;  %v464_v11 = vpop.xlane.xlu2 %463 }
 0x1ab   :  { %v470_v12 = vmul.f32 %v464_v11, %v443_v44 }
 0x1ac   :  { %v484_v13 = vsub.f32 1.5, %v483_v10 }
 0x1ad   :  { %v811_v14 = vpop.eup %810  ;;  %v478_v15 = vadd.f32 1e-05, %v470_v12 }
 0x1ae   :  { %v491_v16 = vmul.f32 %v811_v14, %v477_v7  ;;  %v485_v18 = vmul.f32 %v809_v6, %v484_v13  ;;  %vm497_vm5 = vweird.f32 %v811_v14 }
 0x1af   :  { %812 = vrsqrt.f32 %v478_v15  ;;  %vm498_vm7 = vmor %vm496_vm6, %vm497_vm5  ;;  %vm506_vm9 = vweird.f32 %v478_v15 }
 0x1b0   :  { %v492_v19 = vmul.f32 %v811_v14, %v491_v16  ;;  %v489_v20 = vsel %vm488_vm4, %v809_v6, %v485_v18 }
 0x1b1   :  { %v520_v21 = vmul.f32 %v489_v20, %v472_v17 }
 0x1b2   :  { %v493_v22 = vmul.f32 0.5, %v492_v19  ;;  %v467_v23 = vpop.xlane.xlu2 %466 }
 0x1b3   :  { %v471_v24 = vmul.f32 %v467_v23, %v443_v44  ;;  %526 = vperm.xlu2 %805, %v520_v21  }
 0x1b4   :  { %v494_v25 = vsub.f32 1.5, %v493_v22 }
 0x1b5   :  { %v813_v26 = vpop.eup %812  ;;  %v479_v27 = vadd.f32 1e-05, %v471_v24 }
 0x1b6   :  { %v501_v28 = vmul.f32 %v813_v26, %v478_v15  ;;  %v495_v30 = vmul.f32 %v811_v14, %v494_v25  ;;  %vm507_vm8 = vweird.f32 %v813_v26 }
 0x1b7   :  { %814 = vrsqrt.f32 %v479_v27  ;;  %vm508_vm10 = vmor %vm506_vm9, %vm507_vm8  ;;  %vm516_vm12 = vweird.f32 %v479_v27 }
 0x1b8   :  { %v502_v31 = vmul.f32 %v813_v26, %v501_v28  ;;  %v499_v32 = vsel %vm498_vm7, %v811_v14, %v495_v30 }
 0x1b9   :  { %v521_v33 = vmul.f32 %v499_v32, %v473_v29 }
 0x1ba   :  { %v503_v34 = vmul.f32 0.5, %v502_v31 }
 0x1bb   :  { %531 = vperm.xlu0 %803, %v521_v33  }
 0x1bc   :  { %v504_v35 = vsub.f32 1.5, %v503_v34 }
 0x1bd   :  { %v815_v36 = vpop.eup %814 }
 0x1be   :  { %v511_v37 = vmul.f32 %v815_v36, %v479_v27  ;;  %v505_v39 = vmul.f32 %v813_v26, %v504_v35  ;;  %vm517_vm11 = vweird.f32 %v815_v36 }
 0x1bf   :  { %vm518_vm13 = vmor %vm516_vm12, %vm517_vm11 }
 0x1c0   :  { %v512_v40 = vmul.f32 %v815_v36, %v511_v37  ;;  %v509_v42 = vsel %vm508_vm10, %v813_v26, %v505_v39 }
 0x1c1   :  { %v522_v43 = vmul.f32 %v509_v42, %v474_v38 }
 0x1c2   :  { %v513_v44 = vmul.f32 0.5, %v512_v40 }
 0x1c3   :  { %569 = vperm.xlu0 %803, %v551_v41   ;;  %536 = vperm.xlu1 %804, %v522_v43  }
 0x1c4   :  { %v514_v45 = vsub.f32 1.5, %v513_v44 }
 0x1c6   :  { %v515_v48 = vmul.f32 %v815_v36, %v514_v45 }
 0x1c8   :  { %v519_v50 = vsel %vm518_vm13, %v815_v36, %v515_v48 }
 0x1c9   :  { %v523_v51 = vmul.f32 %v519_v50, %v475_v46 }
 0x1cb   :  { %564 = vperm.xlu1 %804, %v550_v49   ;;  %541 = vperm.xlu2 %805, %v523_v51  }
 0x1d3   :  { %559 = vperm.xlu2 %805, %v549_v53  }
 0x20d   :  { %v527_v54 = vpop.permute.xlu2 %526 }
 0x20e   :  { %v544_v55 = vmul.f32 %v527_v54, %v1011_v47 }
 0x210   :  { %v572_v58 = vadd.f32 %v555_v56, %v544_v55 }
 0x212   :  { %vm576_vm14 = vcmp.ge.f32.partialorder %v572_v58, 0.0  ;;  %v580_v59 = vmul.f32 0.2, %v572_v58 }
 0x214   :  { %v584_v60 = vsel %vm576_vm14, %v572_v58, %v580_v59 }
 0x215   :  { %v588_v61 = vpack.c.bf16 %v584_v60, %v584_v60 }
 0x217   :  { %593 = vst.msk [vmem:[%s1077_s5] sm:$0xf] %vm592_vm15, %v588_v61 }
 0x225   :  { %v542_v63 = vpop.permute.xlu2 %541 }
 0x226   :  { %v547_v4 = vmul.f32 %v542_v63, %v1026_v62 }
 0x22d   :  { %v532_v0 = vpop.permute.xlu0 %531  ;;  %v560_v2 = vpop.permute.xlu2 %559 }
 0x22e   :  { %v545_v1 = vmul.f32 %v532_v0, %v1016_v52 }
 0x230   :  { %v573_v3 = vadd.f32 %v560_v2, %v545_v1 }
 0x232   :  { %vm577_vm0 = vcmp.ge.f32.partialorder %v573_v3, 0.0  ;;  %v581_v47 = vmul.f32 0.2, %v573_v3 }
 0x234   :  { %v585_v5 = vsel %vm577_vm0, %v573_v3, %v581_v47 }
 0x235   :  { %v589_v6 = vpack.c.bf16 %v585_v5, %v585_v5  ;;  %v570_v7 = vpop.permute.xlu0 %569  ;;  %v537_v8 = vpop.permute.xlu1 %536 }
 0x236   :  { %v575_v9 = vadd.f32 %v570_v7, %v547_v4  ;;  %v546_v12 = vmul.f32 %v537_v8, %v1021_v57 }
 0x237   :  { %594 = vst.msk [vmem:[%s1077_s5 + $0x4] sm:$0xf] %vm592_vm15, %v589_v6 }
 0x238   :  { %vm579_vm1 = vcmp.ge.f32.partialorder %v575_v9, 0.0  ;;  %v583_v10 = vmul.f32 0.2, %v575_v9 }
 0x23a   :  { %v587_v11 = vsel %vm579_vm1, %v575_v9, %v583_v10 }
 0x23b   :  { %v591_v52 = vpack.c.bf16 %v587_v11, %v587_v11 }
 0x23d   :  { %596 = vst.msk [vmem:[%s1077_s5 + $0xc] sm:$0xf] %vm592_vm15, %v591_v52  ;;  %v565_v62 = vpop.permute.xlu1 %564 }
 0x23e   :  { %v574_v13 = vadd.f32 %v565_v62, %v546_v12 }
 0x240   :  { %vm578_vm2 = vcmp.ge.f32.partialorder %v574_v13, 0.0  ;;  %v582_v14 = vmul.f32 0.2, %v574_v13 }
 0x242   :  { %v586_v15 = vsel %vm578_vm2, %v574_v13, %v582_v14 }
 0x243   :  { %v590_v16 = vpack.c.bf16 %v586_v15, %v586_v15 }
 0x245   :  { %595 = vst.msk [vmem:[%s1077_s5 + $0x8] sm:$0xf] %vm592_vm15, %v590_v16 }

// kernel: _lambda_.10
= control target key start
LH: loop header
LB: loop body
LE: loop exit
PB: predicated region body
PF: predicated region fallthrough
CT: control target
= control target key end

     0   :  { %v345_v1 = vmov 0   ;;  %vm91_vm0 = vcmask 523264   ;;  %vm117_vm1 = vcmask 15360   ;;  %v346_v28 = vmov 2.0   ;;  %s475_s0 = inlined_call_operand.vmem [shape: bf16[64,2], index: 0, kind: input, shape index: {}]   ;;  %s476_s2 = inlined_call_operand.vmem [shape: f32[32,1], index: 2, kind: input, shape index: {}]   ;;  %s477_s1 = inlined_call_operand.vmem [shape: bf16[32,64], index: 1, kind: input, shape index: {}]   ;;  %s478_s4 = inlined_call_operand.vmem [shape: f32[32,1], index: 4, kind: input, shape index: {}]   ;;  %s479_s3 = inlined_call_operand.vmem [shape: f32[32,1], index: 3, kind: input, shape index: {}]   ;;  %s480_s5 = inlined_call_operand.vmem [shape: bf16[32,2], index: 5, kind: output, shape index: {}]  }
   0x1   :  { %v325_v0 = vld [vmem:[%s475_s0 + $0x18] sm:$0xff]  ;;  %332 = vset.pattern.permute.xlu0 %v345_v1  ;;  %333 = vset.pattern.permute.xlu1 %v345_v1  ;;  %v324_v2 = vld [vmem:[%s475_s0 + $0x10] sm:$0xff]  ;;  %v33_v3 = vld [vmem:[%s476_s2] sm:$0xff]  ;;  %335 = vrcp.f32 %v346_v28 }
   0x2   :  { %334 = vset.pattern.permute.xlu2 %v345_v1  ;;  %102 = vmatpush.bf16.msra.mxu0 %v325_v0  ;;  %v35_v4 = vld [vmem:[%s476_s2 + $0x10] sm:$0xff]  ;;  %v323_v5 = vld [vmem:[%s475_s0 + $0x8] sm:$0xff]  ;;  %v36_v7 = vld [vmem:[%s476_s2 + $0x18] sm:$0xff] }
   0x3   :  { %326 = vmatpush.bf16.msra.mxu1 %v325_v0  ;;  %39 = vperm.xlu0 %332, %v33_v3   ;;  %v34_v6 = vld [vmem:[%s476_s2 + $0x8] sm:$0xff]  ;;  %v322_v8 = vld [vmem:[%s475_s0] sm:$0xff] }
   0x4   :  { %49 = vperm.xlu1 %333, %v35_v4   ;;  %v320_v9 = vld [vmem:[%s477_s1] sm:$0xff]  ;;  %v321_v10 = vld [vmem:[%s477_s1 + $0x8] sm:$0xff] }
   0x5   :  { %v241_v27 = vld [vmem:[%s478_s4] sm:$0xff]  ;;  %v166_v28 = vld [vmem:[%s479_s3 + $0x8] sm:$0xff] }
   0x6   :  { %103 = vmatpush.bf16.msra.mxu0 %v324_v2 }
   0x7   :  { %327 = vmatpush.bf16.msra.mxu1 %v324_v2  ;;  %v336_v29 = vpop.eup %335 }
   0x8   :  { %v131_v30 = vmul.f32 2.0, %v336_v29  ;;  %vm135_vm2 = vweird.f32 %v336_v29 }
   0xa   :  { %104 = vmatpush.bf16.msra.mxu0 %v323_v5  ;;  %v132_v31 = vsub.f32 1.0, %v131_v30 }
   0xb   :  { %328 = vmatpush.bf16.msra.mxu1 %v323_v5  ;;  %44 = vperm.xlu0 %332, %v34_v6  }
   0xc   :  { %54 = vperm.xlu1 %333, %v36_v7   ;;  %v133_v32 = vmul.f32 %v336_v29, %v132_v31  ;;  %v165_v7 = vld [vmem:[%s479_s3] sm:$0xff]  ;;  %v243_v31 = vld [vmem:[%s478_s4 + $0x10] sm:$0xff] }
   0xe   :  { %105 = vmatpush.bf16.msra.mxu0 %v322_v8  ;;  %v134_v33 = vadd.f32 %v336_v29, %v133_v32 }
   0xf   :  { %329 = vmatpush.bf16.msra.mxu1 %v322_v8 }
  0x10   :  { %v136_v34 = vsel %vm135_vm2, %v336_v29, %v134_v33 }
  0x11   :  { %318 = vmatmul.msk.bf16.vlgmr.msra.gmra.mxu0 %vm91_vm0, %v320_v9 }
  0x12   :  { %319 = vmatmul.msk.bf16.vlgmr.msra.gmra.mxu1 %vm91_vm0, %v321_v10  ;;  %vm285_vm0 = vcmask 11264  }
  0x75   :  { %v40_v12 = vpop.permute.xlu0 %39 }
  0x76   :  { %v50_v11 = vpop.permute.xlu1 %49 }
  0x7d   :  { %v45_v20 = vpop.permute.xlu0 %44 }
  0x7e   :  { %v55_v19 = vpop.permute.xlu1 %54 }
  0x8e   :  { %v107_v13 = vpop.f32.mrf.mxu0 }
  0x8f   :  { %v112_v14 = vpop.f32.mrf.mxu1  ;;  %v108_v15 = vadd.f32 %v107_v13, %v40_v12 }
  0x90   :  { %v113_v16 = vadd.f32 %v112_v14, %v50_v11 }
  0x91   :  { %v118_v18 = vsel %vm117_vm1, %v108_v15, 0.0 }
  0x92   :  { %v124_v17 = vsel %vm117_vm1, %v113_v16, 0.0  ;;  %119 = vadd.xlane.f32.xlu2 %v118_v18 }
  0x93   :  { %125 = vadd.xlane.f32.xlu0 %v124_v17 }
  0x96   :  { %v109_v21 = vpop.f32.mrf.mxu0 }
  0x97   :  { %v114_v22 = vpop.f32.mrf.mxu1  ;;  %v110_v23 = vadd.f32 %v109_v21, %v45_v20 }
  0x98   :  { %v115_v24 = vadd.f32 %v114_v22, %v55_v19  ;;  %v167_v19 = vld [vmem:[%s479_s3 + $0x10] sm:$0xff] }
  0x99   :  { %v121_v26 = vsel %vm117_vm1, %v110_v23, 0.0 }
  0x9a   :  { %v127_v25 = vsel %vm117_vm1, %v115_v24, 0.0  ;;  %122 = vadd.xlane.f32.xlu2 %v121_v26 }
  0x9b   :  { %128 = vadd.xlane.f32.xlu1 %v127_v25 }
  0xa7   :  { %247 = vperm.xlu0 %332, %v241_v27  }
 0x105   :  { %v120_v36 = vpop.xlane.xlu2 %119 }
 0x106   :  { %v126_v35 = vpop.xlane.xlu0 %125  ;;  %v137_v37 = vmul.f32 %v136_v34, %v120_v36  ;;  %v168_v36 = vld [vmem:[%s479_s3 + $0x18] sm:$0xff] }
 0x107   :  { %v139_v38 = vmul.f32 %v136_v34, %v126_v35 }
 0x108   :  { %v414_v39 = vsub.f32 %v108_v15, %v137_v37 }
 0x109   :  { %v418_v41 = vsub.f32 %v113_v16, %v139_v38  ;;  %v244_v38 = vld [vmem:[%s478_s4 + $0x18] sm:$0xff] }
 0x10a   :  { %v145_v40 = vmul.f32 %v414_v39, %v414_v39 }
 0x10b   :  { %v147_v45 = vmul.f32 %v418_v41, %v418_v41 }
 0x10c   :  { %v149_v42 = vsel %vm117_vm1, %v145_v40, 0.0 }
 0x10d   :  { %150 = vadd.xlane.f32.xlu2 %v149_v42  ;;  %v123_v43 = vpop.xlane.xlu2 %122  ;;  %v155_v47 = vsel %vm117_vm1, %v147_v45, 0.0 }
 0x10e   :  { %v138_v44 = vmul.f32 %v136_v34, %v123_v43  ;;  %v129_v48 = vpop.xlane.xlu1 %128  ;;  %v242_v43 = vld [vmem:[%s478_s4 + $0x8] sm:$0xff] }
 0x10f   :  { %v140_v49 = vmul.f32 %v136_v34, %v129_v48 }
 0x110   :  { %v423_v46 = vsub.f32 %v110_v23, %v138_v44 }
 0x111   :  { %v428_v51 = vsub.f32 %v115_v24, %v140_v49 }
 0x112   :  { %v146_v50 = vmul.f32 %v423_v46, %v423_v46 }
 0x113   :  { %v148_v53 = vmul.f32 %v428_v51, %v428_v51 }
 0x114   :  { %v152_v52 = vsel %vm117_vm1, %v146_v50, 0.0 }
 0x115   :  { %156 = vadd.xlane.f32.xlu2 %v155_v47  ;;  %v158_v54 = vsel %vm117_vm1, %v148_v53, 0.0 }
 0x119   :  { %v248_v47 = vpop.permute.xlu0 %247 }
 0x11d   :  { %153 = vadd.xlane.f32.xlu2 %v152_v52 }
 0x125   :  { %159 = vadd.xlane.f32.xlu2 %v158_v54 }
 0x180   :  { %v151_v55 = vpop.xlane.xlu2 %150 }
 0x181   :  { %v161_v56 = vmul.f32 %v151_v55, %v136_v34 }
 0x183   :  { %v169_v57 = vadd.f32 1e-05, %v161_v56 }
 0x185   :  { %337 = vrsqrt.f32 %v169_v57  ;;  %vm179_vm4 = vweird.f32 %v169_v57 }
 0x188   :  { %v157_v58 = vpop.xlane.xlu2 %156 }
 0x189   :  { %v163_v59 = vmul.f32 %v157_v58, %v136_v34 }
 0x18b   :  { %v338_v60 = vpop.eup %337  ;;  %v171_v61 = vadd.f32 1e-05, %v163_v59 }
 0x18c   :  { %v174_v62 = vmul.f32 %v338_v60, %v169_v57  ;;  %vm180_vm3 = vweird.f32 %v338_v60 }
 0x18d   :  { %339 = vrsqrt.f32 %v171_v61  ;;  %vm181_vm5 = vmor %vm179_vm4, %vm180_vm3  ;;  %vm199_vm7 = vweird.f32 %v171_v61 }
 0x18e   :  { %v175_v63 = vmul.f32 %v338_v60, %v174_v62 }
 0x190   :  { %v176_v0 = vmul.f32 0.5, %v175_v63  ;;  %v154_v1 = vpop.xlane.xlu2 %153 }
 0x191   :  { %v162_v2 = vmul.f32 %v154_v1, %v136_v34 }
 0x192   :  { %v177_v3 = vsub.f32 1.5, %v176_v0 }
 0x193   :  { %v340_v4 = vpop.eup %339  ;;  %v170_v5 = vadd.f32 1e-05, %v162_v2 }
 0x194   :  { %v194_v6 = vmul.f32 %v340_v4, %v171_v61  ;;  %v178_v8 = vmul.f32 %v338_v60, %v177_v3  ;;  %vm200_vm6 = vweird.f32 %v340_v4 }
 0x195   :  { %341 = vrsqrt.f32 %v170_v5  ;;  %vm201_vm8 = vmor %vm199_vm7, %vm200_vm6  ;;  %vm189_vm10 = vweird.f32 %v170_v5 }
 0x196   :  { %v195_v9 = vmul.f32 %v340_v4, %v194_v6  ;;  %v182_v10 = vsel %vm181_vm5, %v338_v60, %v178_v8 }
 0x197   :  { %v213_v11 = vmul.f32 %v182_v10, %v165_v7 }
 0x198   :  { %v196_v12 = vmul.f32 0.5, %v195_v9  ;;  %v160_v13 = vpop.xlane.xlu2 %159 }
 0x199   :  { %v164_v14 = vmul.f32 %v160_v13, %v136_v34  ;;  %219 = vperm.xlu2 %334, %v213_v11  }
 0x19a   :  { %v197_v15 = vsub.f32 1.5, %v196_v12 }
 0x19b   :  { %v342_v16 = vpop.eup %341  ;;  %v172_v17 = vadd.f32 1e-05, %v164_v14 }
 0x19c   :  { %v184_v18 = vmul.f32 %v342_v16, %v170_v5  ;;  %v198_v20 = vmul.f32 %v340_v4, %v197_v15  ;;  %vm190_vm9 = vweird.f32 %v342_v16 }
 0x19d   :  { %343 = vrsqrt.f32 %v172_v17  ;;  %vm191_vm11 = vmor %vm189_vm10, %vm190_vm9  ;;  %vm209_vm13 = vweird.f32 %v172_v17 }
 0x19e   :  { %v185_v21 = vmul.f32 %v342_v16, %v184_v18  ;;  %v202_v22 = vsel %vm201_vm8, %v340_v4, %v198_v20 }
 0x19f   :  { %v215_v23 = vmul.f32 %v202_v22, %v167_v19 }
 0x1a0   :  { %v186_v24 = vmul.f32 0.5, %v185_v21 }
 0x1a1   :  { %229 = vperm.xlu1 %333, %v215_v23  }
 0x1a2   :  { %v187_v25 = vsub.f32 1.5, %v186_v24 }
 0x1a3   :  { %v344_v26 = vpop.eup %343 }
 0x1a4   :  { %v204_v27 = vmul.f32 %v344_v26, %v172_v17  ;;  %v188_v29 = vmul.f32 %v342_v16, %v187_v25  ;;  %vm210_vm12 = vweird.f32 %v344_v26 }
 0x1a5   :  { %vm211_vm14 = vmor %vm209_vm13, %vm210_vm12 }
 0x1a6   :  { %v205_v30 = vmul.f32 %v344_v26, %v204_v27  ;;  %v192_v32 = vsel %vm191_vm11, %v342_v16, %v188_v29 }
 0x1a7   :  { %v214_v33 = vmul.f32 %v192_v32, %v166_v28 }
 0x1a8   :  { %v206_v34 = vmul.f32 0.5, %v205_v30 }
 0x1a9   :  { %257 = vperm.xlu1 %333, %v243_v31   ;;  %224 = vperm.xlu0 %332, %v214_v33  }
 0x1aa   :  { %v207_v35 = vsub.f32 1.5, %v206_v34 }
 0x1ac   :  { %v208_v37 = vmul.f32 %v344_v26, %v207_v35 }
 0x1ae   :  { %v212_v40 = vsel %vm211_vm14, %v344_v26, %v208_v37 }
 0x1af   :  { %v216_v42 = vmul.f32 %v212_v40, %v168_v36 }
 0x1b1   :  { %262 = vperm.xlu0 %332, %v244_v38   ;;  %234 = vperm.xlu2 %334, %v216_v42  }
 0x1b9   :  { %252 = vperm.xlu2 %334, %v242_v43  }
 0x1f3   :  { %v220_v44 = vpop.permute.xlu2 %219 }
 0x1f4   :  { %v237_v45 = vmul.f32 %v220_v44, %v414_v39 }
 0x1f6   :  { %v265_v48 = vadd.f32 %v248_v47, %v237_v45 }
 0x1f8   :  { %vm269_vm15 = vcmp.ge.f32.partialorder %v265_v48, 0.0  ;;  %v273_v49 = vmul.f32 0.2, %v265_v48 }
 0x1fa   :  { %v277_v50 = vsel %vm269_vm15, %v265_v48, %v273_v49 }
 0x1fb   :  { %v281_v52 = vpack.c.bf16 %v277_v50, %v277_v50 }
 0x1fd   :  { %286 = vst.msk [vmem:[%s480_s5] sm:$0xf] %vm285_vm0, %v281_v52 }
 0x20b   :  { %v235_v53 = vpop.permute.xlu2 %234 }
 0x20c   :  { %v240_v1 = vmul.f32 %v235_v53, %v428_v51 }
 0x213   :  { %v230_v54 = vpop.permute.xlu1 %229  ;;  %v253_v59 = vpop.permute.xlu2 %252 }
 0x214   :  { %v239_v55 = vmul.f32 %v230_v54, %v418_v41 }
 0x21b   :  { %v258_v56 = vpop.permute.xlu1 %257  ;;  %v225_v57 = vpop.permute.xlu0 %224 }
 0x21c   :  { %v267_v58 = vadd.f32 %v258_v56, %v239_v55  ;;  %v238_v39 = vmul.f32 %v225_v57, %v423_v46 }
 0x21e   :  { %vm271_vm1 = vcmp.ge.f32.partialorder %v267_v58, 0.0  ;;  %v275_v60 = vmul.f32 0.2, %v267_v58  ;;  %v266_v61 = vadd.f32 %v253_v59, %v238_v39 }
 0x220   :  { %v279_v62 = vsel %vm271_vm1, %v267_v58, %v275_v60  ;;  %vm270_vm2 = vcmp.ge.f32.partialorder %v266_v61, 0.0  ;;  %v274_v63 = vmul.f32 0.2, %v266_v61 }
 0x221   :  { %v283_v0 = vpack.c.bf16 %v279_v62, %v279_v62 }
 0x222   :  { %v278_v2 = vsel %vm270_vm2, %v266_v61, %v274_v63 }
 0x223   :  { %288 = vst.msk [vmem:[%s480_s5 + $0x8] sm:$0xf] %vm285_vm0, %v283_v0  ;;  %v282_v41 = vpack.c.bf16 %v278_v2, %v278_v2  ;;  %v263_v3 = vpop.permute.xlu0 %262 }
 0x224   :  { %v268_v4 = vadd.f32 %v263_v3, %v240_v1 }
 0x225   :  { %287 = vst.msk [vmem:[%s480_s5 + $0x4] sm:$0xf] %vm285_vm0, %v282_v41 }
 0x226   :  { %vm272_vm3 = vcmp.ge.f32.partialorder %v268_v4, 0.0  ;;  %v276_v46 = vmul.f32 0.2, %v268_v4 }
 0x228   :  { %v280_v5 = vsel %vm272_vm3, %v268_v4, %v276_v46 }
 0x229   :  { %v284_v6 = vpack.c.bf16 %v280_v5, %v280_v5 }
 0x22b   :  { %289 = vst.msk [vmem:[%s480_s5 + $0xc] sm:$0xf] %vm285_vm0, %v284_v6 }

// kernel: _lambda_.11
= control target key start
LH: loop header
LB: loop body
LE: loop exit
PB: predicated region body
PF: predicated region fallthrough
CT: control target
= control target key end

     0   :  { %s178_s0 = inlined_call_operand.vmem [shape: bf16[32,2], index: 0, kind: input, shape index: {}]   ;;  %s179_s1 = inlined_call_operand.vmem [shape: bf16[1,32], index: 1, kind: input, shape index: {}]   ;;  %s180_s2 = inlined_call_operand.<no memory space> [shape: f32[1,1], index: 2, kind: input, shape index: {}]   ;;  %s181_s3 = inlined_call_operand.hbm [shape: f32[1,2], index: 3, kind: output, shape index: {}]  }
   0x1   :  { %v8_v0 = vstv %s180_s2 }
   0x2   :  { %9 = vst [vmem:[#allocation2] sm:$0x1] %v8_v0 }
   0x3   :  { %v107_v1 = vld [vmem:[%s178_s0 + $0x8] sm:$0xff]  ;;  %v141_v2 = vmov 0  }
   0x4   :  { %110 = vset.pattern.permute.xlu0 %v141_v2 }
   0x9   :  { %v23_v3 = vld [vmem:[#allocation2] sm:$0x1] }
   0xa   :  { %10 = vsyncpa [#allocation4], 0  ;;  %52 = vmatpush.bf16.msra.mxu0 %v107_v1  ;;  %v106_v4 = vld [vmem:[%s178_s0] sm:$0xff]  ;;  %26 = vperm.xlu0 %110, %v23_v3   ;;  %vm42_vm0 = vcmask 261120   ;;  %s142_s0 = smov [#allocation3]   ;;  %s87_s21 = sshll.u32 %s181_s3, 4  ;;  %s88_s21 = int_to_ptr.hbm [resolvable:$true] %s87_s21 }
   0xb   :  { %v18_v5 = vld [vmem:[%s179_s1] sm:$0x1]  ;;  %s85_s1 = sshll.u32 %s142_s0, 4  ;;  %vm78_vm4 = vcmask 8192   ;;  %s86_s1 = int_to_ptr.vmem [resolvable:$true] %s85_s1 }
   0xe   :  { %53 = vmatpush.bf16.msra.mxu0 %v106_v4 }
  0x11   :  { %104 = vmatmul.msk.bf16.vlgmr.msra.gmra.mxu0 %vm42_vm0, %v18_v5 }
  0x7c   :  { %v27_v6 = vpop.permute.xlu0 %26 }
  0x7d   :  { %v29_v7 = vperm.slane %v27_v6, 0 }
  0x8e   :  { %v55_v8 = vpop.f32.mrf.mxu0 }
  0x8f   :  { %v56_v9 = vadd.f32 %v55_v8, %v29_v7 }
  0x91   :  { %v105_v10 = vmul.f32 -1.442695, %v56_v9 }
  0x93   :  { %111 = vpow2.f32 %v105_v10 }
  0x96   :  { %v57_v11 = vpop.f32.mrf.mxu0 }
  0x99   :  { %v112_v12 = vpop.eup %111 }
  0x9a   :  { %v62_v13 = vadd.f32 1.0, %v112_v12 }
  0x9c   :  { %113 = vrcp.f32 %v62_v13  ;;  %v74_v17 = vand.u32 2147483648, %v62_v13  ;;  %v72_v19 = vand.u32 2147483647, %v62_v13  ;;  %vm68_vm2 = vweird.f32 %v62_v13 }
  0x9e   :  { %v75_v21 = vor.u32 1.1754944e-38, %v74_v17  ;;  %vm73_vm5 = vcmp.eq.f32.partialorder %v72_v19, 8.507059e+37 }
  0xa2   :  { %v114_v14 = vpop.eup %113 }
  0xa3   :  { %v64_v15 = vmul.f32 %v114_v14, %v62_v13  ;;  %vm69_vm1 = vweird.f32 %v114_v14 }
  0xa4   :  { %vm70_vm3 = vmor %vm68_vm2, %vm69_vm1 }
  0xa5   :  { %v65_v16 = vsub.f32 1.0, %v64_v15 }
  0xa7   :  { %v66_v18 = vmul.f32 %v114_v14, %v65_v16 }
  0xa9   :  { %v67_v20 = vadd.f32 %v114_v14, %v66_v18 }
  0xab   :  { %v71_v22 = vsel %vm70_vm3, %v114_v14, %v67_v20 }
  0xac   :  { %v76_v23 = vsel %vm73_vm5, %v75_v21, %v71_v22 }
  0xad   :  { %79 = vst.msk [vmem:[#allocation3] sm:$0x1] %vm78_vm4, %v76_v23 }
  0xae   :  { %90 = dma.vmem_to_hbm [thread:$0]  %s86_s1, 16, %s88_s21, [#allocation4]  }
  0xaf   :  { %139 = dma.done.wait [#allocation4], 16  }
  0xb0   :  { %140 = vsyncadd [#allocation4], 4294967280 }
  0xb1   :  { %95 = vsyncpa [#allocation4], 1 }

</bundles_post_ra>
